<compile_context>
chip_gen: v5e
topology: v5e:2x2
jax: 0.10.0
libtpu: 0.0.40
codegen_flags: <defaults>
</compile_context>

<pallas_src>
import functools

import jax
import jax.numpy as jnp
import numpy as np
from jax import lax
from jax.experimental import pallas as pl
from jax.experimental.pallas import tpu as pltpu

EPS = 1e-5
NEG_SLOPE = 0.2
LANE = 128
VMEM_LIMIT = 32 * 1024 * 1024  # fits scoped VMEM on v5e/v6e/v7x


def _round_up(x, m):
    return (x + m - 1) // m * m


def _pick_tile(m, cap=1024):
    t = cap
    while t >= 8:
        if m % t == 0:
            return t
        t //= 2
    return m


# ---------------------------------------------------------------------------
# Phase 1: fused conv1 + conv2 (+ per-image BN partial stats), one image/step
# ---------------------------------------------------------------------------
def _conv_conv_stats_kernel(xs_ref, w1s_ref, w2f_ref, y2_ref, stats_ref,
                            y1pad_ref, *, oh, ow, cs, cp):
    # xs_ref   : (1, HS, WS, CS)  space-to-depth'd, padded input image
    # w1s_ref  : (4, CS, CP)      conv1 weights, tap-major, out-ch padded
    # w2f_ref  : (9, CP, CP)      conv2 weights, tap-major, in/out padded
    # y2_ref   : (1, OH*OW, CP)   pre-BN conv2 output
    # stats_ref: (1, 8, CP)       row0 = sum, row1 = sum of squares
    # y1pad_ref: VMEM scratch (OH+2, OW+2, CP), conv1 output with zero halo
    xs = xs_ref[0]                                            # (HS, WS, CS)

    # conv1: 4x4/s2/p1 == 2x2 "valid" conv over the space-to-depth input.
    acc1 = jnp.zeros((oh * ow, cp), jnp.float32)
    for a in range(2):
        for b in range(2):
            tap = xs[a:a + oh, b:b + ow, :].reshape(oh * ow, cs)
            acc1 = acc1 + jnp.dot(tap, w1s_ref[2 * a + b],
                                  preferred_element_type=jnp.float32)

    # keep conv1 output in VMEM with a zero halo (no HBM round trip).
    y1pad_ref[...] = jnp.zeros_like(y1pad_ref)
    y1pad_ref[1:oh + 1, 1:ow + 1, :] = (
        acc1.reshape(oh, ow, cp).astype(y1pad_ref.dtype))

    # conv2: 3x3/s1/p1 as 9 shifted matmuls over the halo scratch.
    acc2 = jnp.zeros((oh * ow, cp), jnp.float32)
    for i in range(3):
        for j in range(3):
            tap = y1pad_ref[i:i + oh, j:j + ow, :].reshape(oh * ow, cp)
            acc2 = acc2 + jnp.dot(tap, w2f_ref[3 * i + j],
                                  preferred_element_type=jnp.float32)

    y2_ref[0] = acc2

    # per-image BatchNorm partials (reduced across images in the wrapper).
    s1 = jnp.sum(acc2, axis=0, keepdims=True)
    s2 = jnp.sum(acc2 * acc2, axis=0, keepdims=True)
    stats_ref[0] = jnp.concatenate(
        [s1, s2, jnp.zeros((6, cp), jnp.float32)], axis=0)


# ---------------------------------------------------------------------------
# Phase 2: BN apply + LeakyReLU, lane-dense, tiled over M = N*OH*OW
# ---------------------------------------------------------------------------
def _bn_lrelu_kernel(y_ref, scale_ref, shift_ref, o_ref):
    z = y_ref[...] * scale_ref[0:1, :] + shift_ref[0:1, :]
    o_ref[...] = jnp.where(z > 0, z, NEG_SLOPE * z)


# ---------------------------------------------------------------------------
# Wrapper
# ---------------------------------------------------------------------------
def unet_encoder_block(x_nchw, w1, w2, gamma, beta, *, dot_dtype=jnp.float32):
    """Forward pass of UnetEncoderBlock (BatchNorm2d -> no conv bias,
    num_layer=1, no dropout). Input/output are NCHW float32."""
    n, c_in, h, w = x_nchw.shape
    c_out = w1.shape[0]
    oh, ow = h // 2, w // 2
    cp = _round_up(c_out, LANE)        # lane-dense padded channel count
    cs = 4 * c_in                      # space-to-depth channels
    hs, ws = (h + 2) // 2, (w + 2) // 2

    # ---- cheap O(input)/O(weights) layout prep in plain JAX ---------------
    x = jnp.transpose(x_nchw, (0, 2, 3, 1))                    # NHWC
    xp = jnp.pad(x, ((0, 0), (1, 1), (1, 1), (0, 0)))
    xs = (xp.reshape(n, hs, 2, ws, 2, c_in)
            .transpose(0, 1, 3, 2, 4, 5)
            .reshape(n, hs, ws, cs)).astype(dot_dtype)

    # conv1 weight (O,I,4,4) -> (tap(2x2), 4*I, O_pad) matching s2d ordering
    w1s = (w1.reshape(c_out, c_in, 2, 2, 2, 2)
             .transpose(2, 4, 3, 5, 1, 0)
             .reshape(4, cs, c_out))
    w1s = jnp.pad(w1s, ((0, 0), (0, 0), (0, cp - c_out))).astype(dot_dtype)

    # conv2 weight (O,O,3,3) -> (tap(3x3), I_pad, O_pad)
    w2f = w2.transpose(2, 3, 1, 0).reshape(9, c_out, c_out)
    w2f = jnp.pad(w2f, ((0, 0), (0, cp - c_out),
                        (0, cp - c_out))).astype(dot_dtype)

    # ---- phase 1 pallas_call ----------------------------------------------
    # TODO(synk): for very large spatial sizes, add a row-tile grid axis with
    # a 1-row halo instead of one full image per grid step.
    kernel1 = functools.partial(_conv_conv_stats_kernel,
                                oh=oh, ow=ow, cs=cs, cp=cp)
    flops1 = 2 * n * oh * ow * (4 * cs * cp + 9 * cp * cp)
    bytes1 = (xs.size * xs.dtype.itemsize
              + w1s.size * w1s.dtype.itemsize
              + w2f.size * w2f.dtype.itemsize
              + 4 * n * oh * ow * cp + 4 * n * 8 * cp)
    y2, stats = pl.pallas_call(
        kernel1,
        out_shape=(jax.ShapeDtypeStruct((n, oh * ow, cp), jnp.float32),
                   jax.ShapeDtypeStruct((n, 8, cp), jnp.float32)),
        grid=(n,),
        in_specs=[
            pl.BlockSpec((1, hs, ws, cs), lambda b: (b, 0, 0, 0)),
            pl.BlockSpec((4, cs, cp), lambda b: (0, 0, 0)),
            pl.BlockSpec((9, cp, cp), lambda b: (0, 0, 0)),
        ],
        out_specs=(
            pl.BlockSpec((1, oh * ow, cp), lambda b: (b, 0, 0)),
            pl.BlockSpec((1, 8, cp), lambda b: (b, 0, 0)),
        ),
        scratch_shapes=[pltpu.VMEM((oh + 2, ow + 2, cp), dot_dtype)],
        compiler_params=pltpu.CompilerParams(
            dimension_semantics=("parallel",),
            vmem_limit_bytes=VMEM_LIMIT),
        cost_estimate=pl.CostEstimate(flops=flops1, transcendentals=0,
                                      bytes_accessed=bytes1),
    )(xs, w1s, w2f)

    # ---- tiny cross-image reduction -> per-channel scale / shift ----------
    count = n * oh * ow
    tot = jnp.sum(stats[:, 0, :], axis=0)
    tot_sq = jnp.sum(stats[:, 1, :], axis=0)
    mean = tot / count
    var = jnp.maximum(tot_sq / count - mean * mean, 0.0)       # biased var
    gamma_p = jnp.pad(gamma.astype(jnp.float32), (0, cp - c_out),
                      constant_values=1.0)
    beta_p = jnp.pad(beta.astype(jnp.float32), (0, cp - c_out))
    scale = gamma_p * lax.rsqrt(var + EPS)
    shift = beta_p - mean * scale
    scale_rep = jnp.broadcast_to(scale.reshape(1, cp), (8, cp))
    shift_rep = jnp.broadcast_to(shift.reshape(1, cp), (8, cp))

    # ---- phase 2 pallas_call ----------------------------------------------
    m = n * oh * ow
    tm = _pick_tile(m)
    y2_flat = y2.reshape(m, cp)
    flops2 = 3 * m * cp
    bytes2 = 4 * (2 * m * cp + 2 * 8 * cp)
    out_flat = pl.pallas_call(
        _bn_lrelu_kernel,
        out_shape=jax.ShapeDtypeStruct((m, cp), jnp.float32),
        grid=(m // tm,),
        in_specs=[
            pl.BlockSpec((tm, cp), lambda i: (i, 0)),
            pl.BlockSpec((8, cp), lambda i: (0, 0)),
            pl.BlockSpec((8, cp), lambda i: (0, 0)),
        ],
        out_specs=pl.BlockSpec((tm, cp), lambda i: (i, 0)),
        compiler_params=pltpu.CompilerParams(
            dimension_semantics=("parallel",),
            vmem_limit_bytes=VMEM_LIMIT),
        cost_estimate=pl.CostEstimate(flops=flops2, transcendentals=0,
                                      bytes_accessed=bytes2),
    )(y2_flat, scale_rep, shift_rep)

    out = out_flat.reshape(n, oh, ow, cp)[:, :, :, :c_out]
    return jnp.transpose(out, (0, 3, 1, 2))                    # NHWC -> NCHW


# ---------------------------------------------------------------------------
# Pure-JAX reference (for sanity check)
# ---------------------------------------------------------------------------
def _reference(x, w1, w2, gamma, beta):
    dn = ("NCHW", "OIHW", "NCHW")
    y = lax.conv_general_dilated(x, w1, (2, 2), ((1, 1), (1, 1)),
                                 dimension_numbers=dn)
    y = lax.conv_general_dilated(y, w2, (1, 1), ((1, 1), (1, 1)),
                                 dimension_numbers=dn)
    mean = jnp.mean(y, axis=(0, 2, 3), keepdims=True)
    var = jnp.mean((y - mean) ** 2, axis=(0, 2, 3), keepdims=True)
    z = (y - mean) * lax.rsqrt(var + EPS)
    z = z * gamma.reshape(1, -1, 1, 1) + beta.reshape(1, -1, 1, 1)
    return jnp.where(z > 0, z, NEG_SLOPE * z)


# ---------------------------------------------------------------------------
if __name__ == "__main__":
    input_nc, output_nc = 4, 8
    batch, spatial = 2, 16

    key = jax.random.PRNGKey(0)
    kx, k1, k2 = jax.random.split(key, 3)

    x = jax.random.normal(kx, (batch, input_nc, spatial, spatial), jnp.float32)
    # PyTorch conv weight shapes: (O, I, KH, KW)
    w1 = jax.random.normal(k1, (output_nc, input_nc, 4, 4), jnp.float32) * 0.1
    w2 = jax.random.normal(k2, (output_nc, output_nc, 3, 3), jnp.float32) * 0.1
    gamma = jnp.ones((output_nc,), jnp.float32)    # BatchNorm2d default init
    beta = jnp.zeros((output_nc,), jnp.float32)

    out = jax.jit(unet_encoder_block)(x, w1, w2, gamma, beta)
    out = jax.block_until_ready(out)

    ref = _reference(x, w1, w2, gamma, beta)
    assert out.shape == (batch, output_nc, spatial // 2, spatial // 2), out.shape
    np.testing.assert_allclose(np.asarray(out), np.asarray(ref),
                               rtol=1e-4, atol=1e-4)
    print("KERNEL_OK")
</pallas_src>

<mosaic_0001>
module attributes {stable_mosaic.version = 11 : i64} {
  func.func @_conv_conv_stats_kernel(%arg0: i32, %arg1: memref<1x9x9x16xf32, #tpu.memory_space<vmem>>, %arg2: memref<4x16x128xf32, #tpu.memory_space<vmem>>, %arg3: memref<9x128x128xf32, #tpu.memory_space<vmem>>, %arg4: memref<1x64x128xf32, #tpu.memory_space<vmem>>, %arg5: memref<1x8x128xf32, #tpu.memory_space<vmem>>, %arg6: memref<10x10x128xf32, #tpu.memory_space<vmem>>) attributes {dimension_semantics = [#tpu.dimension_semantics<parallel>], iteration_bounds = array<i64: 2>, scalar_prefetch = 0 : i64, scratch_operands = 1 : i64, tpu.core_type = #tpu.core_type<tc>, window_params = [{transform_indices = @transform_0, window_bounds = array<i64: 1, 9, 9, 16>}, {pipeline_mode = #tpu.pipeline_mode<synchronous>, transform_indices = @transform_1, window_bounds = array<i64: 4, 16, 128>}, {pipeline_mode = #tpu.pipeline_mode<synchronous>, transform_indices = @transform_2, window_bounds = array<i64: 9, 128, 128>}, {transform_indices = @transform_3, window_bounds = array<i64: 1, 64, 128>}, {transform_indices = @transform_4, window_bounds = array<i64: 1, 8, 128>}]} {
    %c0 = arith.constant 0 : index
    %c0_0 = arith.constant 0 : index
    %c0_1 = arith.constant 0 : index
    %c0_2 = arith.constant 0 : index
    %0 = vector.load %arg1[%c0, %c0_0, %c0_1, %c0_2] : memref<1x9x9x16xf32, #tpu.memory_space<vmem>>, vector<1x9x9x16xf32>
    %1 = vector.shape_cast %0 : vector<1x9x9x16xf32> to vector<9x9x16xf32>
    %cst = arith.constant 0.000000e+00 : f32
    %2 = vector.broadcast %cst : f32 to vector<64x128xf32>
    %3 = vector.extract_strided_slice %1 {offsets = [0, 0, 0], sizes = [8, 8, 16], strides = [1, 1, 1]} : vector<9x9x16xf32> to vector<8x8x16xf32>
    %4 = vector.shape_cast %3 : vector<8x8x16xf32> to vector<64x16xf32>
    %c0_3 = arith.constant 0 : index
    %c0_4 = arith.constant 0 : index
    %c0_5 = arith.constant 0 : index
    %5 = vector.load %arg2[%c0_3, %c0_4, %c0_5] : memref<4x16x128xf32, #tpu.memory_space<vmem>>, vector<1x16x128xf32>
    %6 = vector.shape_cast %5 : vector<1x16x128xf32> to vector<16x128xf32>
    %cst_6 = arith.constant dense<0.000000e+00> : vector<64x128xf32>
    %7 = tpu.matmul %4, %6, %cst_6 {dimension_numbers = #tpu.dot_dimension_numbers<[1], [0], [0], [1], [0, 0, 1, 1], [], []>} : vector<64x16xf32>, vector<16x128xf32>, vector<64x128xf32> -> vector<64x128xf32>
    %8 = arith.addf %2, %7 : vector<64x128xf32>
    %9 = vector.extract_strided_slice %1 {offsets = [0, 1, 0], sizes = [8, 8, 16], strides = [1, 1, 1]} : vector<9x9x16xf32> to vector<8x8x16xf32>
    %10 = vector.shape_cast %9 : vector<8x8x16xf32> to vector<64x16xf32>
    %c1 = arith.constant 1 : index
    %c0_7 = arith.constant 0 : index
    %c0_8 = arith.constant 0 : index
    %11 = vector.load %arg2[%c1, %c0_7, %c0_8] : memref<4x16x128xf32, #tpu.memory_space<vmem>>, vector<1x16x128xf32>
    %12 = vector.shape_cast %11 : vector<1x16x128xf32> to vector<16x128xf32>
    %cst_9 = arith.constant dense<0.000000e+00> : vector<64x128xf32>
    %13 = tpu.matmul %10, %12, %cst_9 {dimension_numbers = #tpu.dot_dimension_numbers<[1], [0], [0], [1], [0, 0, 1, 1], [], []>} : vector<64x16xf32>, vector<16x128xf32>, vector<64x128xf32> -> vector<64x128xf32>
    %14 = arith.addf %8, %13 : vector<64x128xf32>
    %15 = vector.extract_strided_slice %1 {offsets = [1, 0, 0], sizes = [8, 8, 16], strides = [1, 1, 1]} : vector<9x9x16xf32> to vector<8x8x16xf32>
    %16 = vector.shape_cast %15 : vector<8x8x16xf32> to vector<64x16xf32>
    %c2 = arith.constant 2 : index
    %c0_10 = arith.constant 0 : index
    %c0_11 = arith.constant 0 : index
    %17 = vector.load %arg2[%c2, %c0_10, %c0_11] : memref<4x16x128xf32, #tpu.memory_space<vmem>>, vector<1x16x128xf32>
    %18 = vector.shape_cast %17 : vector<1x16x128xf32> to vector<16x128xf32>
    %cst_12 = arith.constant dense<0.000000e+00> : vector<64x128xf32>
    %19 = tpu.matmul %16, %18, %cst_12 {dimension_numbers = #tpu.dot_dimension_numbers<[1], [0], [0], [1], [0, 0, 1, 1], [], []>} : vector<64x16xf32>, vector<16x128xf32>, vector<64x128xf32> -> vector<64x128xf32>
    %20 = arith.addf %14, %19 : vector<64x128xf32>
    %21 = vector.extract_strided_slice %1 {offsets = [1, 1, 0], sizes = [8, 8, 16], strides = [1, 1, 1]} : vector<9x9x16xf32> to vector<8x8x16xf32>
    %22 = vector.shape_cast %21 : vector<8x8x16xf32> to vector<64x16xf32>
    %c3 = arith.constant 3 : index
    %c0_13 = arith.constant 0 : index
    %c0_14 = arith.constant 0 : index
    %23 = vector.load %arg2[%c3, %c0_13, %c0_14] : memref<4x16x128xf32, #tpu.memory_space<vmem>>, vector<1x16x128xf32>
    %24 = vector.shape_cast %23 : vector<1x16x128xf32> to vector<16x128xf32>
    %cst_15 = arith.constant dense<0.000000e+00> : vector<64x128xf32>
    %25 = tpu.matmul %22, %24, %cst_15 {dimension_numbers = #tpu.dot_dimension_numbers<[1], [0], [0], [1], [0, 0, 1, 1], [], []>} : vector<64x16xf32>, vector<16x128xf32>, vector<64x128xf32> -> vector<64x128xf32>
    %26 = arith.addf %20, %25 : vector<64x128xf32>
    %cst_16 = arith.constant 0.000000e+00 : f32
    %27 = vector.broadcast %cst_16 : f32 to vector<10x10x128xf32>
    %c0_17 = arith.constant 0 : index
    %c0_18 = arith.constant 0 : index
    %c0_19 = arith.constant 0 : index
    %28 = vector.load %arg6[%c0_17, %c0_18, %c0_19] : memref<10x10x128xf32, #tpu.memory_space<vmem>>, vector<10x10x128xf32>
    tpu.vector_store %arg6[%c0_17, %c0_18, %c0_19], %27 {strides = array<i32>} : memref<10x10x128xf32, #tpu.memory_space<vmem>>, vector<10x10x128xf32>,
    %29 = vector.shape_cast %26 : vector<64x128xf32> to vector<8x8x128xf32>
    %c1_20 = arith.constant 1 : index
    %c1_21 = arith.constant 1 : index
    %c0_22 = arith.constant 0 : index
    %30 = vector.load %arg6[%c1_20, %c1_21, %c0_22] : memref<10x10x128xf32, #tpu.memory_space<vmem>>, vector<8x8x128xf32>
    tpu.vector_store %arg6[%c1_20, %c1_21, %c0_22], %29 {strides = array<i32>} : memref<10x10x128xf32, #tpu.memory_space<vmem>>, vector<8x8x128xf32>,
    %cst_23 = arith.constant 0.000000e+00 : f32
    %31 = vector.broadcast %cst_23 : f32 to vector<64x128xf32>
    %c0_24 = arith.constant 0 : index
    %c0_25 = arith.constant 0 : index
    %c0_26 = arith.constant 0 : index
    %32 = vector.load %arg6[%c0_24, %c0_25, %c0_26] : memref<10x10x128xf32, #tpu.memory_space<vmem>>, vector<8x8x128xf32>
    %33 = vector.shape_cast %32 : vector<8x8x128xf32> to vector<64x128xf32>
    %c0_27 = arith.constant 0 : index
    %c0_28 = arith.constant 0 : index
    %c0_29 = arith.constant 0 : index
    %34 = vector.load %arg3[%c0_27, %c0_28, %c0_29] : memref<9x128x128xf32, #tpu.memory_space<vmem>>, vector<1x128x128xf32>
    %35 = vector.shape_cast %34 : vector<1x128x128xf32> to vector<128x128xf32>
    %cst_30 = arith.constant dense<0.000000e+00> : vector<64x128xf32>
    %36 = tpu.matmul %33, %35, %cst_30 {dimension_numbers = #tpu.dot_dimension_numbers<[1], [0], [0], [1], [0, 0, 1, 1], [], []>} : vector<64x128xf32>, vector<128x128xf32>, vector<64x128xf32> -> vector<64x128xf32>
    %37 = arith.addf %31, %36 : vector<64x128xf32>
    %c0_31 = arith.constant 0 : index
    %c1_32 = arith.constant 1 : index
    %c0_33 = arith.constant 0 : index
    %38 = vector.load %arg6[%c0_31, %c1_32, %c0_33] : memref<10x10x128xf32, #tpu.memory_space<vmem>>, vector<8x8x128xf32>
    %39 = vector.shape_cast %38 : vector<8x8x128xf32> to vector<64x128xf32>
    %c1_34 = arith.constant 1 : index
    %c0_35 = arith.constant 0 : index
    %c0_36 = arith.constant 0 : index
    %40 = vector.load %arg3[%c1_34, %c0_35, %c0_36] : memref<9x128x128xf32, #tpu.memory_space<vmem>>, vector<1x128x128xf32>
    %41 = vector.shape_cast %40 : vector<1x128x128xf32> to vector<128x128xf32>
    %cst_37 = arith.constant dense<0.000000e+00> : vector<64x128xf32>
    %42 = tpu.matmul %39, %41, %cst_37 {dimension_numbers = #tpu.dot_dimension_numbers<[1], [0], [0], [1], [0, 0, 1, 1], [], []>} : vector<64x128xf32>, vector<128x128xf32>, vector<64x128xf32> -> vector<64x128xf32>
    %43 = arith.addf %37, %42 : vector<64x128xf32>
    %c0_38 = arith.constant 0 : index
    %c2_39 = arith.constant 2 : index
    %c0_40 = arith.constant 0 : index
    %44 = vector.load %arg6[%c0_38, %c2_39, %c0_40] : memref<10x10x128xf32, #tpu.memory_space<vmem>>, vector<8x8x128xf32>
    %45 = vector.shape_cast %44 : vector<8x8x128xf32> to vector<64x128xf32>
    %c2_41 = arith.constant 2 : index
    %c0_42 = arith.constant 0 : index
    %c0_43 = arith.constant 0 : index
    %46 = vector.load %arg3[%c2_41, %c0_42, %c0_43] : memref<9x128x128xf32, #tpu.memory_space<vmem>>, vector<1x128x128xf32>
    %47 = vector.shape_cast %46 : vector<1x128x128xf32> to vector<128x128xf32>
    %cst_44 = arith.constant dense<0.000000e+00> : vector<64x128xf32>
    %48 = tpu.matmul %45, %47, %cst_44 {dimension_numbers = #tpu.dot_dimension_numbers<[1], [0], [0], [1], [0, 0, 1, 1], [], []>} : vector<64x128xf32>, vector<128x128xf32>, vector<64x128xf32> -> vector<64x128xf32>
    %49 = arith.addf %43, %48 : vector<64x128xf32>
    %c1_45 = arith.constant 1 : index
    %c0_46 = arith.constant 0 : index
    %c0_47 = arith.constant 0 : index
    %50 = vector.load %arg6[%c1_45, %c0_46, %c0_47] : memref<10x10x128xf32, #tpu.memory_space<vmem>>, vector<8x8x128xf32>
    %51 = vector.shape_cast %50 : vector<8x8x128xf32> to vector<64x128xf32>
    %c3_48 = arith.constant 3 : index
    %c0_49 = arith.constant 0 : index
    %c0_50 = arith.constant 0 : index
    %52 = vector.load %arg3[%c3_48, %c0_49, %c0_50] : memref<9x128x128xf32, #tpu.memory_space<vmem>>, vector<1x128x128xf32>
    %53 = vector.shape_cast %52 : vector<1x128x128xf32> to vector<128x128xf32>
    %cst_51 = arith.constant dense<0.000000e+00> : vector<64x128xf32>
    %54 = tpu.matmul %51, %53, %cst_51 {dimension_numbers = #tpu.dot_dimension_numbers<[1], [0], [0], [1], [0, 0, 1, 1], [], []>} : vector<64x128xf32>, vector<128x128xf32>, vector<64x128xf32> -> vector<64x128xf32>
    %55 = arith.addf %49, %54 : vector<64x128xf32>
    %c1_52 = arith.constant 1 : index
    %c1_53 = arith.constant 1 : index
    %c0_54 = arith.constant 0 : index
    %56 = vector.load %arg6[%c1_52, %c1_53, %c0_54] : memref<10x10x128xf32, #tpu.memory_space<vmem>>, vector<8x8x128xf32>
    %57 = vector.shape_cast %56 : vector<8x8x128xf32> to vector<64x128xf32>
    %c4 = arith.constant 4 : index
    %c0_55 = arith.constant 0 : index
    %c0_56 = arith.constant 0 : index
    %58 = vector.load %arg3[%c4, %c0_55, %c0_56] : memref<9x128x128xf32, #tpu.memory_space<vmem>>, vector<1x128x128xf32>
    %59 = vector.shape_cast %58 : vector<1x128x128xf32> to vector<128x128xf32>
    %cst_57 = arith.constant dense<0.000000e+00> : vector<64x128xf32>
    %60 = tpu.matmul %57, %59, %cst_57 {dimension_numbers = #tpu.dot_dimension_numbers<[1], [0], [0], [1], [0, 0, 1, 1], [], []>} : vector<64x128xf32>, vector<128x128xf32>, vector<64x128xf32> -> vector<64x128xf32>
    %61 = arith.addf %55, %60 : vector<64x128xf32>
    %c1_58 = arith.constant 1 : index
    %c2_59 = arith.constant 2 : index
    %c0_60 = arith.constant 0 : index
    %62 = vector.load %arg6[%c1_58, %c2_59, %c0_60] : memref<10x10x128xf32, #tpu.memory_space<vmem>>, vector<8x8x128xf32>
    %63 = vector.shape_cast %62 : vector<8x8x128xf32> to vector<64x128xf32>
    %c5 = arith.constant 5 : index
    %c0_61 = arith.constant 0 : index
    %c0_62 = arith.constant 0 : index
    %64 = vector.load %arg3[%c5, %c0_61, %c0_62] : memref<9x128x128xf32, #tpu.memory_space<vmem>>, vector<1x128x128xf32>
    %65 = vector.shape_cast %64 : vector<1x128x128xf32> to vector<128x128xf32>
    %cst_63 = arith.constant dense<0.000000e+00> : vector<64x128xf32>
    %66 = tpu.matmul %63, %65, %cst_63 {dimension_numbers = #tpu.dot_dimension_numbers<[1], [0], [0], [1], [0, 0, 1, 1], [], []>} : vector<64x128xf32>, vector<128x128xf32>, vector<64x128xf32> -> vector<64x128xf32>
    %67 = arith.addf %61, %66 : vector<64x128xf32>
    %c2_64 = arith.constant 2 : index
    %c0_65 = arith.constant 0 : index
    %c0_66 = arith.constant 0 : index
    %68 = vector.load %arg6[%c2_64, %c0_65, %c0_66] : memref<10x10x128xf32, #tpu.memory_space<vmem>>, vector<8x8x128xf32>
    %69 = vector.shape_cast %68 : vector<8x8x128xf32> to vector<64x128xf32>
    %c6 = arith.constant 6 : index
    %c0_67 = arith.constant 0 : index
    %c0_68 = arith.constant 0 : index
    %70 = vector.load %arg3[%c6, %c0_67, %c0_68] : memref<9x128x128xf32, #tpu.memory_space<vmem>>, vector<1x128x128xf32>
    %71 = vector.shape_cast %70 : vector<1x128x128xf32> to vector<128x128xf32>
    %cst_69 = arith.constant dense<0.000000e+00> : vector<64x128xf32>
    %72 = tpu.matmul %69, %71, %cst_69 {dimension_numbers = #tpu.dot_dimension_numbers<[1], [0], [0], [1], [0, 0, 1, 1], [], []>} : vector<64x128xf32>, vector<128x128xf32>, vector<64x128xf32> -> vector<64x128xf32>
    %73 = arith.addf %67, %72 : vector<64x128xf32>
    %c2_70 = arith.constant 2 : index
    %c1_71 = arith.constant 1 : index
    %c0_72 = arith.constant 0 : index
    %74 = vector.load %arg6[%c2_70, %c1_71, %c0_72] : memref<10x10x128xf32, #tpu.memory_space<vmem>>, vector<8x8x128xf32>
    %75 = vector.shape_cast %74 : vector<8x8x128xf32> to vector<64x128xf32>
    %c7 = arith.constant 7 : index
    %c0_73 = arith.constant 0 : index
    %c0_74 = arith.constant 0 : index
    %76 = vector.load %arg3[%c7, %c0_73, %c0_74] : memref<9x128x128xf32, #tpu.memory_space<vmem>>, vector<1x128x128xf32>
    %77 = vector.shape_cast %76 : vector<1x128x128xf32> to vector<128x128xf32>
    %cst_75 = arith.constant dense<0.000000e+00> : vector<64x128xf32>
    %78 = tpu.matmul %75, %77, %cst_75 {dimension_numbers = #tpu.dot_dimension_numbers<[1], [0], [0], [1], [0, 0, 1, 1], [], []>} : vector<64x128xf32>, vector<128x128xf32>, vector<64x128xf32> -> vector<64x128xf32>
    %79 = arith.addf %73, %78 : vector<64x128xf32>
    %c2_76 = arith.constant 2 : index
    %c2_77 = arith.constant 2 : index
    %c0_78 = arith.constant 0 : index
    %80 = vector.load %arg6[%c2_76, %c2_77, %c0_78] : memref<10x10x128xf32, #tpu.memory_space<vmem>>, vector<8x8x128xf32>
    %81 = vector.shape_cast %80 : vector<8x8x128xf32> to vector<64x128xf32>
    %c8 = arith.constant 8 : index
    %c0_79 = arith.constant 0 : index
    %c0_80 = arith.constant 0 : index
    %82 = vector.load %arg3[%c8, %c0_79, %c0_80] : memref<9x128x128xf32, #tpu.memory_space<vmem>>, vector<1x128x128xf32>
    %83 = vector.shape_cast %82 : vector<1x128x128xf32> to vector<128x128xf32>
    %cst_81 = arith.constant dense<0.000000e+00> : vector<64x128xf32>
    %84 = tpu.matmul %81, %83, %cst_81 {dimension_numbers = #tpu.dot_dimension_numbers<[1], [0], [0], [1], [0, 0, 1, 1], [], []>} : vector<64x128xf32>, vector<128x128xf32>, vector<64x128xf32> -> vector<64x128xf32>
    %85 = arith.addf %79, %84 : vector<64x128xf32>
    %c0_82 = arith.constant 0 : index
    %c0_83 = arith.constant 0 : index
    %c0_84 = arith.constant 0 : index
    %86 = vector.load %arg4[%c0_82, %c0_83, %c0_84] : memref<1x64x128xf32, #tpu.memory_space<vmem>>, vector<1x64x128xf32>
    %87 = vector.shape_cast %86 : vector<1x64x128xf32> to vector<64x128xf32>
    %88 = vector.shape_cast %85 : vector<64x128xf32> to vector<1x64x128xf32>
    tpu.vector_store %arg4[%c0_82, %c0_83, %c0_84], %88 {strides = array<i32>} : memref<1x64x128xf32, #tpu.memory_space<vmem>>, vector<1x64x128xf32>,
    %cst_85 = arith.constant dense<0.000000e+00> : vector<128xf32>
    %89 = vector.multi_reduction <add>, %85, %cst_85 [0] : vector<64x128xf32> to vector<128xf32>
    %90 = vector.shape_cast %89 : vector<128xf32> to vector<1x128xf32>
    %91 = arith.mulf %85, %85 : vector<64x128xf32>
    %cst_86 = arith.constant dense<0.000000e+00> : vector<128xf32>
    %92 = vector.multi_reduction <add>, %91, %cst_86 [0] : vector<64x128xf32> to vector<128xf32>
    %93 = vector.shape_cast %92 : vector<128xf32> to vector<1x128xf32>
    %cst_87 = arith.constant 0.000000e+00 : f32
    %94 = vector.broadcast %cst_87 : f32 to vector<6x128xf32>
    %95 = tpu.concatenate %90, %93, %94 in 0 : vector<1x128xf32>, vector<1x128xf32>, vector<6x128xf32> -> vector<8x128xf32>
    %c0_88 = arith.constant 0 : index
    %c0_89 = arith.constant 0 : index
    %c0_90 = arith.constant 0 : index
    %96 = vector.load %arg5[%c0_88, %c0_89, %c0_90] : memref<1x8x128xf32, #tpu.memory_space<vmem>>, vector<1x8x128xf32>
    %97 = vector.shape_cast %96 : vector<1x8x128xf32> to vector<8x128xf32>
    %98 = vector.shape_cast %95 : vector<8x128xf32> to vector<1x8x128xf32>
    tpu.vector_store %arg5[%c0_88, %c0_89, %c0_90], %98 {strides = array<i32>} : memref<1x8x128xf32, #tpu.memory_space<vmem>>, vector<1x8x128xf32>,
    return
  }
  func.func @transform_0(%arg0: i32) -> (i32, i32, i32, i32) {
    %c0_i32 = arith.constant 0 : i32
    %c0_i32_0 = arith.constant 0 : i32
    %c0_i32_1 = arith.constant 0 : i32
    %c0_i32_2 = arith.constant 0 : i32
    return %arg0, %c0_i32, %c0_i32_0, %c0_i32_1 : i32, i32, i32, i32
  }
  func.func @transform_1(%arg0: i32) -> (i32, i32, i32) {
    %c0_i32 = arith.constant 0 : i32
    %c0_i32_0 = arith.constant 0 : i32
    %c0_i32_1 = arith.constant 0 : i32
    %c0_i32_2 = arith.constant 0 : i32
    return %c0_i32, %c0_i32_0, %c0_i32_1 : i32, i32, i32
  }
  func.func @transform_2(%arg0: i32) -> (i32, i32, i32) {
    %c0_i32 = arith.constant 0 : i32
    %c0_i32_0 = arith.constant 0 : i32
    %c0_i32_1 = arith.constant 0 : i32
    %c0_i32_2 = arith.constant 0 : i32
    return %c0_i32, %c0_i32_0, %c0_i32_1 : i32, i32, i32
  }
  func.func @transform_3(%arg0: i32) -> (i32, i32, i32) {
    %c0_i32 = arith.constant 0 : i32
    %c0_i32_0 = arith.constant 0 : i32
    %c0_i32_1 = arith.constant 0 : i32
    return %arg0, %c0_i32, %c0_i32_0 : i32, i32, i32
  }
  func.func @transform_4(%arg0: i32) -> (i32, i32, i32) {
    %c0_i32 = arith.constant 0 : i32
    %c0_i32_0 = arith.constant 0 : i32
    %c0_i32_1 = arith.constant 0 : i32
    return %arg0, %c0_i32, %c0_i32_0 : i32, i32, i32
  }
}

module attributes {stable_mosaic.version = 11 : i64} {
  func.func @_bn_lrelu_kernel(%arg0: i32, %arg1: memref<128x128xf32, #tpu.memory_space<vmem>>, %arg2: memref<8x128xf32, #tpu.memory_space<vmem>>, %arg3: memref<8x128xf32, #tpu.memory_space<vmem>>, %arg4: memref<128x128xf32, #tpu.memory_space<vmem>>) attributes {dimension_semantics = [#tpu.dimension_semantics<parallel>], iteration_bounds = array<i64: 1>, scalar_prefetch = 0 : i64, scratch_operands = 0 : i64, tpu.core_type = #tpu.core_type<tc>, window_params = [{transform_indices = @transform_0, window_bounds = array<i64: 128, 128>}, {pipeline_mode = #tpu.pipeline_mode<synchronous>, transform_indices = @transform_1, window_bounds = array<i64: 8, 128>}, {pipeline_mode = #tpu.pipeline_mode<synchronous>, transform_indices = @transform_2, window_bounds = array<i64: 8, 128>}, {transform_indices = @transform_3, window_bounds = array<i64: 128, 128>}]} {
    %c0 = arith.constant 0 : index
    %c0_0 = arith.constant 0 : index
    %0 = vector.load %arg1[%c0, %c0_0] : memref<128x128xf32, #tpu.memory_space<vmem>>, vector<128x128xf32>
    %c0_1 = arith.constant 0 : index
    %c0_2 = arith.constant 0 : index
    %1 = vector.load %arg2[%c0_1, %c0_2] : memref<8x128xf32, #tpu.memory_space<vmem>>, vector<1x128xf32>
    %2 = vector.broadcast %1 : vector<1x128xf32> to vector<128x128xf32>
    %3 = arith.mulf %0, %2 : vector<128x128xf32>
    %c0_3 = arith.constant 0 : index
    %c0_4 = arith.constant 0 : index
    %4 = vector.load %arg3[%c0_3, %c0_4] : memref<8x128xf32, #tpu.memory_space<vmem>>, vector<1x128xf32>
    %5 = vector.broadcast %4 : vector<1x128xf32> to vector<128x128xf32>
    %6 = arith.addf %3, %5 : vector<128x128xf32>
    %cst = arith.constant 0.000000e+00 : f32
    %7 = vector.broadcast %cst : f32 to vector<128x128xf32>
    %8 = arith.cmpf ogt, %6, %7 : vector<128x128xf32>
    %cst_5 = arith.constant 2.000000e-01 : f32
    %9 = vector.broadcast %cst_5 : f32 to vector<128x128xf32>
    %10 = arith.mulf %9, %6 : vector<128x128xf32>
    %11 = arith.select %8, %6, %10 : vector<128x128xi1>, vector<128x128xf32>
    %c0_6 = arith.constant 0 : index
    %c0_7 = arith.constant 0 : index
    %12 = vector.load %arg4[%c0_6, %c0_7] : memref<128x128xf32, #tpu.memory_space<vmem>>, vector<128x128xf32>
    tpu.vector_store %arg4[%c0_6, %c0_7], %11 {strides = array<i32>} : memref<128x128xf32, #tpu.memory_space<vmem>>, vector<128x128xf32>,
    return
  }
  func.func @transform_0(%arg0: i32) -> (i32, i32) {
    %c0_i32 = arith.constant 0 : i32
    %c0_i32_0 = arith.constant 0 : i32
    return %arg0, %c0_i32 : i32, i32
  }
  func.func @transform_1(%arg0: i32) -> (i32, i32) {
    %c0_i32 = arith.constant 0 : i32
    %c0_i32_0 = arith.constant 0 : i32
    %c0_i32_1 = arith.constant 0 : i32
    return %c0_i32, %c0_i32_0 : i32, i32
  }
  func.func @transform_2(%arg0: i32) -> (i32, i32) {
    %c0_i32 = arith.constant 0 : i32
    %c0_i32_0 = arith.constant 0 : i32
    %c0_i32_1 = arith.constant 0 : i32
    return %c0_i32, %c0_i32_0 : i32, i32
  }
  func.func @transform_3(%arg0: i32) -> (i32, i32) {
    %c0_i32 = arith.constant 0 : i32
    %c0_i32_0 = arith.constant 0 : i32
    return %arg0, %c0_i32 : i32, i32
  }
}

</mosaic_0001>

<bundles_post_ra>
// kernel: unet_encoder_block.3
= control target key start
LH: loop header
LB: loop body
LE: loop exit
PB: predicated region body
PF: predicated region fallthrough
CT: control target
= control target key end

     0   :  { %s294_s0 = inlined_call_operand.vmem [shape: f32[128,128], index: 0, kind: input, shape index: {}]   ;;  %s295_s1 = inlined_call_operand.vmem [shape: f32[8,128], index: 1, kind: input, shape index: {}]   ;;  %s296_s2 = inlined_call_operand.vmem [shape: f32[8,128], index: 2, kind: input, shape index: {}]   ;;  %s297_s3 = inlined_call_operand.vmem [shape: f32[128,128], index: 3, kind: output, shape index: {}]  }
   0x1   :  { %v14_v0 = vld [vmem:[%s294_s0] sm:$0xff]  ;;  %v15_v3 = vld [vmem:[%s294_s0 + $0x8] sm:$0xff]  ;;  %v16_v6 = vld [vmem:[%s294_s0 + $0x10] sm:$0xff] }
   0x2   :  { %v162_v1 = vld [vmem:[%s295_s1] ss:$0 sm:$0xff]  ;;  %v17_v7 = vld [vmem:[%s294_s0 + $0x18] sm:$0xff]  ;;  %v19_v12 = vld [vmem:[%s294_s0 + $0x28] sm:$0xff] }
   0x3   :  { %v167_v2 = vld [vmem:[%s296_s2] ss:$0 sm:$0xff]  ;;  %v32_v4 = vmul.f32 %v162_v1, %v14_v0  ;;  %v33_v5 = vmul.f32 %v162_v1, %v15_v3  ;;  %v34_v9 = vmul.f32 %v162_v1, %v16_v6  ;;  %v35_v10 = vmul.f32 %v162_v1, %v17_v7  ;;  %v20_v13 = vld [vmem:[%s294_s0 + $0x30] sm:$0xff]  ;;  %v21_v14 = vld [vmem:[%s294_s0 + $0x38] sm:$0xff] }
   0x4   :  { %v18_v8 = vld [vmem:[%s294_s0 + $0x20] sm:$0xff]  ;;  %v37_v17 = vmul.f32 %v162_v1, %v19_v12  ;;  %v38_v18 = vmul.f32 %v162_v1, %v20_v13  ;;  %v39_v22 = vmul.f32 %v162_v1, %v21_v14  ;;  %v23_v24 = vld [vmem:[%s294_s0 + $0x48] sm:$0xff]  ;;  %v24_v32 = vld [vmem:[%s294_s0 + $0x50] sm:$0xff] }
   0x5   :  { %v36_v11 = vmul.f32 %v162_v1, %v18_v8  ;;  %v50_v15 = vadd.f32 %v167_v2, %v32_v4  ;;  %v51_v16 = vadd.f32 %v167_v2, %v33_v5  ;;  %v52_v19 = vadd.f32 %v167_v2, %v34_v9  ;;  %v22_v23 = vld [vmem:[%s294_s0 + $0x40] sm:$0xff]  ;;  %v25_v41 = vld [vmem:[%s294_s0 + $0x58] sm:$0xff]  ;;  %v27_v52 = vld [vmem:[%s294_s0 + $0x68] sm:$0xff] }
   0x6   :  { %v53_v20 = vadd.f32 %v167_v2, %v35_v10  ;;  %v55_v35 = vadd.f32 %v167_v2, %v37_v17  ;;  %v56_v36 = vadd.f32 %v167_v2, %v38_v18  ;;  %v57_v38 = vadd.f32 %v167_v2, %v39_v22  ;;  %v26_v51 = vld [vmem:[%s294_s0 + $0x60] sm:$0xff]  ;;  %v28_v56 = vld [vmem:[%s294_s0 + $0x70] sm:$0xff]  ;;  %v29_v59 = vld [vmem:[%s294_s0 + $0x78] sm:$0xff] }
   0x7   :  { %v54_v21 = vadd.f32 %v167_v2, %v36_v11  ;;  %vm66_vm0 = vcmp.gt.f32.partialorder %v50_v15, 0.0  ;;  %v82_v25 = vmul.f32 0.2, %v50_v15  ;;  %vm67_vm1 = vcmp.gt.f32.partialorder %v51_v16, 0.0 }
   0x8   :  { %v83_v26 = vmul.f32 0.2, %v51_v16  ;;  %vm68_vm2 = vcmp.gt.f32.partialorder %v52_v19, 0.0  ;;  %v84_v27 = vmul.f32 0.2, %v52_v19  ;;  %vm69_vm3 = vcmp.gt.f32.partialorder %v53_v20, 0.0 }
   0x9   :  { %v85_v28 = vmul.f32 0.2, %v53_v20  ;;  %v98_v29 = vsel %vm66_vm0, %v50_v15, %v82_v25  ;;  %vm70_vm4 = vcmp.gt.f32.partialorder %v54_v21, 0.0  ;;  %v86_v31 = vmul.f32 0.2, %v54_v21 }
   0xa   :  { %v99_v30 = vsel %vm67_vm1, %v51_v16, %v83_v26  ;;  %114 = vst [vmem:[%s297_s3] sm:$0xff] %v98_v29  ;;  %v100_v33 = vsel %vm68_vm2, %v52_v19, %v84_v27  ;;  %v40_v39 = vmul.f32 %v162_v1, %v22_v23  ;;  %v41_v40 = vmul.f32 %v162_v1, %v23_v24 }
   0xb   :  { %v101_v34 = vsel %vm69_vm3, %v53_v20, %v85_v28  ;;  %115 = vst [vmem:[%s297_s3 + $0x8] sm:$0xff] %v99_v30  ;;  %v102_v37 = vsel %vm70_vm4, %v54_v21, %v86_v31  ;;  %vm71_vm5 = vcmp.gt.f32.partialorder %v55_v35, 0.0  ;;  %v87_v42 = vmul.f32 0.2, %v55_v35 }
   0xc   :  { %116 = vst [vmem:[%s297_s3 + $0x10] sm:$0xff] %v100_v33  ;;  %vm72_vm6 = vcmp.gt.f32.partialorder %v56_v36, 0.0  ;;  %v42_v43 = vmul.f32 %v162_v1, %v24_v32  ;;  %v88_v44 = vmul.f32 0.2, %v56_v36  ;;  %vm73_vm7 = vcmp.gt.f32.partialorder %v57_v38, 0.0 }
   0xd   :  { %117 = vst [vmem:[%s297_s3 + $0x18] sm:$0xff] %v101_v34  ;;  %v89_v45 = vmul.f32 0.2, %v57_v38  ;;  %v58_v46 = vadd.f32 %v167_v2, %v40_v39  ;;  %v103_v47 = vsel %vm71_vm5, %v55_v35, %v87_v42  ;;  %v59_v48 = vadd.f32 %v167_v2, %v41_v40 }
   0xe   :  { %118 = vst [vmem:[%s297_s3 + $0x20] sm:$0xff] %v102_v37  ;;  %v60_v49 = vadd.f32 %v167_v2, %v42_v43  ;;  %v43_v50 = vmul.f32 %v162_v1, %v25_v41  ;;  %v104_v53 = vsel %vm72_vm6, %v56_v36, %v88_v44  ;;  %v44_v62 = vmul.f32 %v162_v1, %v26_v51 }
   0xf   :  { %119 = vst [vmem:[%s297_s3 + $0x28] sm:$0xff] %v103_v47  ;;  %v105_v54 = vsel %vm73_vm7, %v57_v38, %v89_v45  ;;  %vm74_vm8 = vcmp.gt.f32.partialorder %v58_v46, 0.0  ;;  %v90_v55 = vmul.f32 0.2, %v58_v46  ;;  %vm75_vm9 = vcmp.gt.f32.partialorder %v59_v48, 0.0 }
  0x10   :  { %120 = vst [vmem:[%s297_s3 + $0x30] sm:$0xff] %v104_v53  ;;  %v91_v57 = vmul.f32 0.2, %v59_v48  ;;  %vm76_vm10 = vcmp.gt.f32.partialorder %v60_v49, 0.0  ;;  %v61_v58 = vadd.f32 %v167_v2, %v43_v50  ;;  %v92_v61 = vmul.f32 0.2, %v60_v49 }
  0x11   :  { %121 = vst [vmem:[%s297_s3 + $0x38] sm:$0xff] %v105_v54  ;;  %v106_v60 = vsel %vm74_vm8, %v58_v46, %v90_v55  ;;  %v45_v63 = vmul.f32 %v162_v1, %v27_v52  ;;  %v46_v4 = vmul.f32 %v162_v1, %v28_v56  ;;  %v62_v6 = vadd.f32 %v167_v2, %v44_v62 }
  0x12   :  { %122 = vst [vmem:[%s297_s3 + $0x40] sm:$0xff] %v106_v60  ;;  %v107_v0 = vsel %vm75_vm9, %v59_v48, %v91_v57  ;;  %vm77_vm11 = vcmp.gt.f32.partialorder %v61_v58, 0.0  ;;  %v93_v3 = vmul.f32 0.2, %v61_v58  ;;  %v108_v5 = vsel %vm76_vm10, %v60_v49, %v92_v61 }
  0x13   :  { %123 = vst [vmem:[%s297_s3 + $0x48] sm:$0xff] %v107_v0  ;;  %v63_v7 = vadd.f32 %v167_v2, %v45_v63  ;;  %v47_v8 = vmul.f32 %v162_v1, %v29_v59  ;;  %v64_v10 = vadd.f32 %v167_v2, %v46_v4  ;;  %vm78_vm12 = vcmp.gt.f32.partialorder %v62_v6, 0.0 }
  0x14   :  { %124 = vst [vmem:[%s297_s3 + $0x50] sm:$0xff] %v108_v5  ;;  %v109_v9 = vsel %vm77_vm11, %v61_v58, %v93_v3  ;;  %v94_v11 = vmul.f32 0.2, %v62_v6 }
  0x15   :  { %125 = vst [vmem:[%s297_s3 + $0x58] sm:$0xff] %v109_v9  ;;  %vm79_vm13 = vcmp.gt.f32.partialorder %v63_v7, 0.0  ;;  %v65_v12 = vadd.f32 %v167_v2, %v47_v8  ;;  %v95_v13 = vmul.f32 0.2, %v63_v7  ;;  %vm80_vm14 = vcmp.gt.f32.partialorder %v64_v10, 0.0 }
  0x16   :  { %v96_v14 = vmul.f32 0.2, %v64_v10  ;;  %v110_v1 = vsel %vm78_vm12, %v62_v6, %v94_v11 }
  0x17   :  { %vm81_vm15 = vcmp.gt.f32.partialorder %v65_v12, 0.0  ;;  %v97_v15 = vmul.f32 0.2, %v65_v12  ;;  %126 = vst [vmem:[%s297_s3 + $0x60] sm:$0xff] %v110_v1  ;;  %v111_v16 = vsel %vm79_vm13, %v63_v7, %v95_v13 }
  0x18   :  { %v112_v17 = vsel %vm80_vm14, %v64_v10, %v96_v14  ;;  %127 = vst [vmem:[%s297_s3 + $0x68] sm:$0xff] %v111_v16 }
  0x19   :  { %v113_v18 = vsel %vm81_vm15, %v65_v12, %v97_v15  ;;  %128 = vst [vmem:[%s297_s3 + $0x70] sm:$0xff] %v112_v17 }
  0x1a   :  { %129 = vst [vmem:[%s297_s3 + $0x78] sm:$0xff] %v113_v18 }

// kernel: unet_encoder_block.2
= control target key start
LH: loop header
LB: loop body
LE: loop exit
PB: predicated region body
PF: predicated region fallthrough
CT: control target
= control target key end

     0   :  { %s1555_s15 = smov 0   ;;  %s2321_s0 = inlined_call_operand.vmem [shape: f32[2,9,9,16], index: 0, kind: input, shape index: {}]   ;;  %s2322_s1 = inlined_call_operand.vmem [shape: f32[4,16,128], index: 1, kind: input, shape index: {}]   ;;  %s2323_s2 = inlined_call_operand.vmem [shape: f32[9,128,128], index: 2, kind: input, shape index: {}]   ;;  %s2324_s3 = inlined_call_operand.vmem [shape: f32[2,64,128], index: 3, kind: output, shape index: {0}]   ;;  %s2325_s4 = inlined_call_operand.vmem [shape: f32[2,8,128], index: 4, kind: output, shape index: {1}]  }
   0x1 LB: > { %s1313_s16 = sadd.s32 4294967295, %s1527_s15   ;;  %p1317_p0 = scmp.ge.s32.totalorder %s1527_s15, 1  ;;  %s1527_s15 = sphi %s1555_s15, %s15_s15  }
   0x2   : > { %p165_p1 = scmp.lt.s32.totalorder %s1527_s15, 3 }
   0x4   : > { %p166_p2 = pnand %p1317_p0, %p165_p1 }
   0x5   : > { %p195_p3 = scmp.lt.s32.totalorder (!%p166_p2), %s1313_s16, 1 }
   0x6   : > { %169 = sbr.rel (%p166_p2) target bundleno = 482 (0x1e2), region = 32 }
   0xb   : > { %v1323_v0 = vld [vmem:[%s2322_s1 + $0x18] sm:$0xff]  ;;  %v1322_v1 = vld [vmem:[%s2322_s1 + $0x10] sm:$0xff]  ;;  %v228_v3 = vld [vmem:[%s2322_s1 + $0x8] sm:$0xff]  ;;  %s2327_s16 = smov (!%p195_p3, %s1313_s16), 1  ;;  %vm245_vm0 = vcmask 1046528   ;;  %vm273_vm1 = vcmask 130048  }
   0xc   : > { %1491 = vmatpush.msra.mxu1 %v1323_v0  ;;  %1492 = vmatpush.msra.mxu3 %v1323_v0  ;;  %v1351_v2 = vld [vmem:[%s2322_s1 + $0x38] sm:$0xff]  ;;  %v1341_v4 = vld [vmem:[%s2322_s1 + $0x28] sm:$0xff]  ;;  %v1340_v5 = vld [vmem:[%s2322_s1 + $0x20] sm:$0xff]  ;;  %s1511_s7 = smul.u32 144, %s2327_s16  ;;  %s1490_s11 = sshll.u32 %s2327_s16, 6  ;;  %vm1222_vm2 = vcmask 1040384  }
   0xd   : > { %408 = vmatpush.msra.mxu2 %v1341_v4  ;;  %304 = vmatpush.msra.mxu0 %v1323_v0  ;;  %v1350_v6 = vld [vmem:[%s2322_s1 + $0x30] sm:$0xff]  ;;  %v227_v7 = vld [vmem:[%s2322_s1] sm:$0xff]  ;;  %v1391_v53 = vld [vmem:[%s2323_s2 + $0x178] sm:$0xff]  ;;  %s2291_s14 = scalar_lea.vmem %s2324_s3, %s1490_s11  ;;  %s1321_s17 = sshll.u32 %s2327_s16, 3  ;;  %vm1224_vm3 = vcmask 1041408  }
   0xe   : > { %1493 = vmatpush.msra.mxu1 %v1322_v1  ;;  %1494 = vmatpush.msra.mxu3 %v1322_v1  ;;  %s1593_s10 = scalar_lea.vmem %s2321_s0, %s1511_s7  ;;  %v1390_v54 = vld [vmem:[%s2323_s2 + $0x170] sm:$0xff]  ;;  %v1375_v55 = vld [vmem:[%s2323_s2 + $0xf8] sm:$0xff]  ;;  %v1389_v58 = vld [vmem:[%s2323_s2 + $0x168] sm:$0xff]  ;;  %s208_s20 = scalar_lea.vmem %s2325_s4, %s1321_s17 }
   0xf   : > { %409 = vmatpush.msra.mxu2 %v1340_v5  ;;  %305 = vmatpush.msra.mxu0 %v1322_v1  ;;  %v1596_v8 = vld [vmem:[%s1593_s10 + $0x40] sm:$0xff]  ;;  %v218_v9 = vld [vmem:[%s1593_s10 + $0x48] sm:$0x1]  ;;  %v1606_v16 = vld [vmem:[%s1593_s10 + $0x50] sm:$0xff] }
  0x10   : > { %466 = vmatpush.msrb.mxu3 %v1351_v2  ;;  %361 = vmatpush.msrb.mxu1 %v228_v3  ;;  %v1600_v10 = vld [vmem:[%s1593_s10 + $0x60] sm:$0xff]  ;;  %v258_v11 = vrot.slane %v1596_v8, 1  ;;  %v259_v12 = vrot.slane %v218_v9, 1  ;;  %v222_v13 = vld [vmem:[%s1593_s10 + $0x68] sm:$0x1]  ;;  %v211_v18 = vld [vmem:[%s1593_s10 + $0x10] sm:$0xff] }
  0x11   : > { %v264_v14 = vrot.slane %v1600_v10, 1  ;;  %v265_v15 = vrot.slane %v222_v13, 1  ;;  %v220_v17 = vld [vmem:[%s1593_s10 + $0x58] sm:$0x1]  ;;  %v1612_v20 = vld [vmem:[%s1593_s10 + $0x70] sm:$0xff]  ;;  %1342 = vmatmul.msk.f32.vlgmr.msra.gmra.mxu2 %vm273_vm1, %v211_v18  ;;  %v209_v22 = vld [vmem:[%s1593_s10] sm:$0xff]  ;;  %579 = vmatpush.msrb.mxu0 %v1375_v55 }
  0x12   : > { %467 = vmatpush.msrb.mxu3 %v1350_v6  ;;  %362 = vmatpush.msrb.mxu1 %v227_v7  ;;  %v260_v19 = vsel %vm245_vm0, %v258_v11, %v259_v12  ;;  %v224_v21 = vld [vmem:[%s1593_s10 + $0x78] sm:$0x1]  ;;  %v246_v24 = vrot.slane %v209_v22, 1  ;;  %v210_v25 = vld [vmem:[%s1593_s10 + $0x8] sm:$0x1]  ;;  %v261_v26 = vrot.slane %v1606_v16, 1 }
  0x13   : > { %1328 = vmatmul.msk.f32.vlgmr.msra.gmra.mxu1 %vm273_vm1, %v260_v19  ;;  %v1619_v23 = vsel %vm245_vm0, %v264_v14, %v265_v15  ;;  %v262_v27 = vrot.slane %v220_v17, 1  ;;  %v247_v28 = vrot.slane %v210_v25, 1  ;;  %v267_v29 = vrot.slane %v1612_v20, 1  ;;  %v212_v32 = vld [vmem:[%s1593_s10 + $0x18] sm:$0x1]  ;;  %v213_v33 = vld [vmem:[%s1593_s10 + $0x20] sm:$0xff]  ;;  %686 = vmatpush.msrb.mxu2 %v1391_v53 }
  0x14   : > { %1330 = vmatmul.msk.f32.vlgmr.msra.gmra.mxu3 %vm273_vm1, %v1619_v23  ;;  %v268_v30 = vrot.slane %v224_v21, 1  ;;  %v249_v36 = vrot.slane %v211_v18, 1  ;;  %v250_v37 = vrot.slane %v212_v32, 1  ;;  %v214_v39 = vld [vmem:[%s1593_s10 + $0x28] sm:$0x1]  ;;  %v215_v40 = vld [vmem:[%s1593_s10 + $0x30] sm:$0xff] }
  0x15   : > { %v248_v31 = vsel %vm245_vm0, %v246_v24, %v247_v28  ;;  %v263_v34 = vsel %vm245_vm0, %v261_v26, %v262_v27  ;;  %v252_v41 = vrot.slane %v213_v33, 1  ;;  %v253_v42 = vrot.slane %v214_v39, 1  ;;  %v216_v44 = vld [vmem:[%s1593_s10 + $0x38] sm:$0x1]  ;;  %v225_v48 = vld [vmem:[%s1593_s10 + $0x80] sm:$0xff]  ;;  %v1374_v57 = vld [vmem:[%s2323_s2 + $0xf0] sm:$0xff]  ;;  %687 = vmatpush.msrb.mxu2 %v1390_v54 }
  0x16   : > { %1324 = vmatmul.msk.f32.vlgmr.msra.gmra.mxu0 %vm273_vm1, %v248_v31  ;;  %v1632_v35 = vsel %vm245_vm0, %v267_v29, %v268_v30  ;;  %v251_v38 = vsel %vm245_vm0, %v249_v36, %v250_v37  ;;  %v255_v45 = vrot.slane %v215_v40, 1  ;;  %v256_v46 = vrot.slane %v216_v44, 1  ;;  %v226_v50 = vld [vmem:[%s1593_s10 + $0x88] sm:$0x1]  ;;  %v553_v56 = vld [vmem:[%s2323_s2 + $0x78] sm:$0xff]  ;;  %v552_v59 = vld [vmem:[%s2323_s2 + $0x70] sm:$0xff] }
  0x17   : > { %v254_v43 = vsel %vm245_vm0, %v252_v41, %v253_v42  ;;  %v444_v49 = vrot.slane %v225_v48, 1  ;;  %v445_v51 = vrot.slane %v226_v50, 1  ;;  %620 = vmatpush.msra.mxu1 %v553_v56  ;;  %v1373_v60 = vld [vmem:[%s2323_s2 + $0xe8] sm:$0xff]  ;;  %580 = vmatpush.msrb.mxu0 %v1374_v57  ;;  %v1388_v62 = vld [vmem:[%s2323_s2 + $0x160] sm:$0xff]  ;;  %v1387_v0 = vld [vmem:[%s2323_s2 + $0x158] sm:$0xff]  ;;  %v1529_v26 = vmov 0.0  }
  0x18   : > { %v257_v47 = vsel %vm245_vm0, %v255_v45, %v256_v46  ;;  %v551_v61 = vld [vmem:[%s2323_s2 + $0x68] sm:$0xff]  ;;  %688 = vmatpush.msrb.mxu2 %v1389_v58  ;;  %v1372_v63 = vld [vmem:[%s2323_s2 + $0xe0] sm:$0xff]  ;;  %v1386_v2 = vld [vmem:[%s2323_s2 + $0x150] sm:$0xff]  ;;  %501 = vst [vmem:[#allocation2] sm:$0xff] %v1529_v26 }
  0x19   : > { %1343 = vmatmul.msk.f32.gmra.mxu2 %vm273_vm1, %v213_v33  ;;  %v446_v52 = vsel %vm245_vm0, %v444_v49, %v445_v51  ;;  %621 = vmatpush.msra.mxu1 %v552_v59  ;;  %v550_v1 = vld [vmem:[%s2323_s2 + $0x60] sm:$0xff]  ;;  %v1371_v3 = vld [vmem:[%s2323_s2 + $0xd8] sm:$0xff]  ;;  %v1385_v5 = vld [vmem:[%s2323_s2 + $0x148] sm:$0xff]  ;;  %502 = vst [vmem:[#allocation2 + $0x8] sm:$0x3] %v1529_v26 }
  0x1a   : > { %581 = vmatpush.msrb.mxu0 %v1373_v60  ;;  %689 = vmatpush.msrb.mxu2 %v1388_v62  ;;  %v549_v4 = vld [vmem:[%s2323_s2 + $0x58] sm:$0xff]  ;;  %v1370_v6 = vld [vmem:[%s2323_s2 + $0xd0] sm:$0xff]  ;;  %v1369_v9 = vld [vmem:[%s2323_s2 + $0xc8] sm:$0xff]  ;;  %503 = vst [vmem:[#allocation2 + $0x10] sm:$0xff] %v1529_v26 }
  0x1b   : > { %1329 = vmatmul.msk.f32.gmra.mxu1 %vm273_vm1, %v263_v34  ;;  %v548_v7 = vld [vmem:[%s2323_s2 + $0x50] sm:$0xff]  ;;  %v1383_v11 = vld [vmem:[%s2323_s2 + $0x138] sm:$0xff]  ;;  %v1368_v14 = vld [vmem:[%s2323_s2 + $0xc0] sm:$0xff]  ;;  %504 = vst [vmem:[#allocation2 + $0x18] sm:$0x3] %v1529_v26 }
  0x1c   : > { %1331 = vmatmul.msk.f32.gmra.mxu3 %vm273_vm1, %v1632_v35  ;;  %622 = vmatpush.msra.mxu1 %v551_v61  ;;  %v1407_v12 = vld [vmem:[%s2323_s2 + $0x1f8] sm:$0xff]  ;;  %v1406_v13 = vld [vmem:[%s2323_s2 + $0x1f0] sm:$0xff]  ;;  %v546_v15 = vld [vmem:[%s2323_s2 + $0x40] sm:$0xff]  ;;  %505 = vst [vmem:[#allocation2 + $0x20] sm:$0xff] %v1529_v26 }
  0x1d   : > { %582 = vmatpush.msrb.mxu0 %v1372_v63  ;;  %690 = vmatpush.msrb.mxu2 %v1387_v0  ;;  %v1367_v17 = vld [vmem:[%s2323_s2 + $0xb8] sm:$0xff]  ;;  %v544_v21 = vld [vmem:[%s2323_s2 + $0x30] sm:$0xff]  ;;  %v1365_v24 = vld [vmem:[%s2323_s2 + $0xa8] sm:$0xff]  ;;  %506 = vst [vmem:[#allocation2 + $0x28] sm:$0x3] %v1529_v26 }
  0x1e   : > { %1325 = vmatmul.msk.f32.gmra.mxu0 %vm273_vm1, %v251_v38  ;;  %623 = vmatpush.msra.mxu1 %v550_v1  ;;  %v543_v25 = vld [vmem:[%s2323_s2 + $0x28] sm:$0xff]  ;;  %v1379_v27 = vld [vmem:[%s2323_s2 + $0x118] sm:$0xff]  ;;  %v1404_v28 = vld [vmem:[%s2323_s2 + $0x1e0] sm:$0xff]  ;;  %507 = vst [vmem:[#allocation2 + $0x30] sm:$0xff] %v1529_v26 }
  0x1f   : > { %691 = vmatpush.msrb.mxu2 %v1386_v2  ;;  %583 = vmatpush.msrb.mxu0 %v1371_v3  ;;  %v1403_v29 = vld [vmem:[%s2323_s2 + $0x1d8] sm:$0xff]  ;;  %v1402_v30 = vld [vmem:[%s2323_s2 + $0x1d0] sm:$0xff]  ;;  %v1364_v31 = vld [vmem:[%s2323_s2 + $0xa0] sm:$0xff]  ;;  %508 = vst [vmem:[#allocation2 + $0x38] sm:$0x3] %v1529_v26 }
  0x20   : > { %624 = vmatpush.msra.mxu1 %v549_v4  ;;  %760 = vmatpush.msra.mxu3 %v1407_v12  ;;  %v542_v32 = vld [vmem:[%s2323_s2 + $0x20] sm:$0xff]  ;;  %v1377_v36 = vld [vmem:[%s2323_s2 + $0x108] sm:$0xff]  ;;  %v1362_v37 = vld [vmem:[%s2323_s2 + $0x90] sm:$0xff]  ;;  %509 = vst [vmem:[#allocation2 + $0x40] sm:$0xff] %v1529_v26 }
  0x21   : > { %1344 = vmatmul.msk.f32.gmra.mxu2 %vm273_vm1, %v215_v40  ;;  %584 = vmatpush.msrb.mxu0 %v1370_v6  ;;  %v1376_v39 = vld [vmem:[%s2323_s2 + $0x100] sm:$0xff]  ;;  %v1361_v41 = vld [vmem:[%s2323_s2 + $0x88] sm:$0xff]  ;;  %510 = vst [vmem:[#allocation2 + $0x48] sm:$0x3] %v1529_v26  ;;  %v1398_v49 = vld [vmem:[%s2323_s2 + $0x1b0] sm:$0xff] }
  0x22   : > { %692 = vmatpush.msrb.mxu2 %v1385_v5  ;;  %625 = vmatpush.msra.mxu1 %v548_v7  ;;  %v661_v42 = vld [vmem:[#allocation2 + $0x2] sm:$0xff]  ;;  %511 = vst [vmem:[#allocation2 + $0x50] sm:$0xff] %v1529_v26  ;;  %v1395_v53 = vld [vmem:[%s2323_s2 + $0x198] sm:$0xff]  ;;  %v1394_v54 = vld [vmem:[%s2323_s2 + $0x190] sm:$0xff] }
  0x23   : > { %1332 = vmatmul.msk.f32.vlgmr.msrb.gmra.mxu1 %vm273_vm1, %v209_v22  ;;  %585 = vmatpush.msrb.mxu0 %v1369_v9  ;;  %v1380_v22 = vld [vmem:[%s2323_s2 + $0x120] sm:$0xff]  ;;  %512 = vst [vmem:[#allocation2 + $0x58] sm:$0x3] %v1529_v26  ;;  %v1397_v50 = vld [vmem:[%s2323_s2 + $0x1a8] sm:$0xff]  ;;  %v1422_v55 = vld [vmem:[%s2323_s2 + $0x270] sm:$0xff] }
  0x24   : > { %1352 = vmatmul.msk.f32.vlgmr.msrb.gmra.mxu3 %vm273_vm1, %v251_v38  ;;  %v540_v38 = vld [vmem:[%s2323_s2 + $0x10] sm:$0xff]  ;;  %v1400_v44 = vld [vmem:[%s2323_s2 + $0x1c0] sm:$0xff]  ;;  %513 = vst [vmem:[#allocation2 + $0x60] sm:$0xff] %v1529_v26  ;;  %v1393_v56 = vld [vmem:[%s2323_s2 + $0x188] sm:$0xff] }
  0x25   : > { %586 = vmatpush.msrb.mxu0 %v1368_v14  ;;  %761 = vmatpush.msra.mxu3 %v1406_v13  ;;  %v1360_v45 = vld [vmem:[%s2323_s2 + $0x80] sm:$0xff]  ;;  %514 = vst [vmem:[#allocation2 + $0x68] sm:$0x3] %v1529_v26  ;;  %v1421_v59 = vld [vmem:[%s2323_s2 + $0x268] sm:$0xff]  ;;  %v1419_v1 = vld [vmem:[%s2323_s2 + $0x258] sm:$0xff] }
  0x26   : > { %1326 = vmatmul.msk.f32.gmra.mxu0 %vm273_vm1, %v254_v43  ;;  %v538_v46 = vld [vmem:[%s2323_s2] sm:$0xff]  ;;  %515 = vst [vmem:[#allocation2 + $0x70] sm:$0xff] %v1529_v26  ;;  %v1418_v2 = vld [vmem:[%s2323_s2 + $0x250] sm:$0xff] }
  0x27   : > { %587 = vmatpush.msrb.mxu0 %v1367_v17  ;;  %516 = vst [vmem:[#allocation2 + $0x78] sm:$0x3] %v1529_v26  ;;  %v1396_v51 = vld [vmem:[%s2323_s2 + $0x1a0] sm:$0xff]  ;;  %v1415_v17 = vld [vmem:[%s2323_s2 + $0x238] sm:$0xff] }
  0x28   : > { %517 = vst [vmem:[#allocation2 + $0x80] sm:$0xff] %v1529_v26  ;;  %v1392_v58 = vld [vmem:[%s2323_s2 + $0x180] sm:$0xff] }
  0x29   : > { %1345 = vmatmul.msk.f32.gmra.mxu2 %vm273_vm1, %v1596_v8  ;;  %518 = vst [vmem:[#allocation2 + $0x88] sm:$0x3] %v1529_v26  ;;  %v1420_v60 = vld [vmem:[%s2323_s2 + $0x260] sm:$0xff] }
  0x2a   : > { %519 = vst [vmem:[#allocation2 + $0x90] sm:$0xff] %v1529_v26  ;;  %v1416_v9 = vld [vmem:[%s2323_s2 + $0x240] sm:$0xff] }
  0x2b   : > { %1333 = vmatmul.msk.f32.gmra.mxu1 %vm273_vm1, %v211_v18  ;;  %v545_v18 = vld [vmem:[%s2323_s2 + $0x38] sm:$0xff]  ;;  %520 = vst [vmem:[#allocation2 + $0x98] sm:$0x3] %v1529_v26 }
  0x2c   : > { %1353 = vmatmul.msk.f32.gmra.mxu3 %vm273_vm1, %v254_v43  ;;  %v539_v43 = vld [vmem:[%s2323_s2 + $0x8] sm:$0xff] }
  0x2e   : > { %1327 = vmatmul.msk.f32.gmra.mxu0 %vm273_vm1, %v257_v47 }
  0x31   : > { %1346 = vmatmul.msk.f32.gmra.mxu2 %vm273_vm1, %v1606_v16 }
  0x33   : > { %1334 = vmatmul.msk.f32.gmra.mxu1 %vm273_vm1, %v213_v33  ;;  %v1378_v33 = vld [vmem:[%s2323_s2 + $0x110] sm:$0xff] }
  0x34   : > { %1354 = vmatmul.msk.f32.gmra.mxu3 %vm273_vm1, %v257_v47  ;;  %v554_v47 = vld [vmem:[#allocation2 + $0x1] sm:$0xff] }
  0x39   : > { %1347 = vmatmul.msk.f32.gmra.mxu2 %vm273_vm1, %v1600_v10 }
  0x3b   : > { %1335 = vmatmul.msk.f32.gmra.mxu1 %vm273_vm1, %v215_v40  ;;  %v1401_v40 = vld [vmem:[%s2323_s2 + $0x1c8] sm:$0xff] }
  0x3c   : > { %1355 = vmatmul.msk.f32.gmra.mxu3 %vm273_vm1, %v260_v19  ;;  %v1381_v19 = vld [vmem:[%s2323_s2 + $0x128] sm:$0xff] }
  0x41   : > { %1348 = vmatmul.msk.f32.gmra.mxu2 %vm273_vm1, %v1612_v20 }
  0x43   : > { %1336 = vmatmul.msk.f32.gmra.mxu1 %vm273_vm1, %v1596_v8  ;;  %v1384_v8 = vld [vmem:[%s2323_s2 + $0x140] sm:$0xff] }
  0x44   : > { %1356 = vmatmul.msk.f32.gmra.mxu3 %vm273_vm1, %v263_v34  ;;  %693 = vmatpush.msrb.mxu2 %v1384_v8  ;;  %v1363_v34 = vld [vmem:[%s2323_s2 + $0x98] sm:$0xff]  ;;  %v1417_v8 = vld [vmem:[%s2323_s2 + $0x248] sm:$0xff] }
  0x46   : > { %694 = vmatpush.msrb.mxu2 %v1383_v11 }
  0x49   : > { %1349 = vmatmul.msk.f32.gmra.mxu2 %vm273_vm1, %v225_v48  ;;  %v1399_v48 = vld [vmem:[%s2323_s2 + $0x1b8] sm:$0xff] }
  0x4b   : > { %1337 = vmatmul.msk.f32.gmra.mxu1 %vm273_vm1, %v1606_v16  ;;  %v1382_v16 = vld [vmem:[%s2323_s2 + $0x130] sm:$0xff] }
  0x4c   : > { %1357 = vmatmul.msk.f32.gmra.mxu3 %vm273_vm1, %v1619_v23  ;;  %695 = vmatpush.msrb.mxu2 %v1382_v16  ;;  %v1405_v23 = vld [vmem:[%s2323_s2 + $0x1e8] sm:$0xff]  ;;  %v1455_v16 = vld [vmem:[%s2323_s2 + $0x378] sm:$0xff] }
  0x4d   : > { %762 = vmatpush.msra.mxu3 %v1405_v23  ;;  %v1414_v23 = vld [vmem:[%s2323_s2 + $0x230] sm:$0xff] }
  0x4e   : > { %696 = vmatpush.msrb.mxu2 %v1381_v19  ;;  %v1454_v19 = vld [vmem:[%s2323_s2 + $0x370] sm:$0xff] }
  0x4f   : > { %763 = vmatpush.msra.mxu3 %v1404_v28 }
  0x50   : > { %697 = vmatpush.msrb.mxu2 %v1380_v22  ;;  %v1438_v22 = vld [vmem:[%s2323_s2 + $0x2f0] sm:$0xff] }
  0x51   : > { %764 = vmatpush.msra.mxu3 %v1403_v29 }
  0x52   : > { %698 = vmatpush.msrb.mxu2 %v1379_v27  ;;  %v1453_v27 = vld [vmem:[%s2323_s2 + $0x368] sm:$0xff] }
  0x53   : > { %1338 = vmatmul.msk.f32.gmra.mxu1 %vm273_vm1, %v1600_v10  ;;  %v547_v10 = vld [vmem:[%s2323_s2 + $0x48] sm:$0xff]  ;;  %765 = vmatpush.msra.mxu3 %v1402_v30 }
  0x54   : > { %1358 = vmatmul.msk.f32.gmra.mxu3 %vm273_vm1, %v1632_v35  ;;  %626 = vmatpush.msra.mxu1 %v547_v10  ;;  %v541_v35 = vld [vmem:[%s2323_s2 + $0x18] sm:$0xff] }
  0x55   : > { %699 = vmatpush.msrb.mxu2 %v1378_v33  ;;  %766 = vmatpush.msra.mxu3 %v1401_v40  ;;  %v1436_v33 = vld [vmem:[%s2323_s2 + $0x2e0] sm:$0xff]  ;;  %v1471_v40 = vld [vmem:[%s2323_s2 + $0x3f8] sm:$0xff] }
  0x56   : > { %627 = vmatpush.msra.mxu1 %v546_v15 }
  0x57   : > { %700 = vmatpush.msrb.mxu2 %v1377_v36  ;;  %767 = vmatpush.msra.mxu3 %v1400_v44  ;;  %v1413_v36 = vld [vmem:[%s2323_s2 + $0x228] sm:$0xff]  ;;  %v1412_v44 = vld [vmem:[%s2323_s2 + $0x220] sm:$0xff] }
  0x58   : > { %628 = vmatpush.msra.mxu1 %v545_v18  ;;  %v1439_v18 = vld [vmem:[%s2323_s2 + $0x2f8] sm:$0xff] }
  0x59   : > { %701 = vmatpush.msrb.mxu2 %v1376_v39  ;;  %768 = vmatpush.msra.mxu3 %v1399_v48 }
  0x5a   : > { %629 = vmatpush.msra.mxu1 %v544_v21  ;;  %702 = vmatmul.f32.vlgmr.msrb.gmra.mxu2 %v661_v42  ;;  %v1450_v42 = vld [vmem:[%s2323_s2 + $0x350] sm:$0xff] }
  0x5b   : > { %1339 = vmatmul.msk.f32.gmra.mxu1 %vm273_vm1, %v1612_v20  ;;  %v1366_v20 = vld [vmem:[%s2323_s2 + $0xb0] sm:$0xff]  ;;  %769 = vmatpush.msra.mxu3 %v1398_v49 }
  0x5c   : > { %1359 = vmatmul.msk.f32.gmra.mxu3 %vm273_vm1, %v446_v52  ;;  %588 = vmatpush.msrb.mxu0 %v1366_v20  ;;  %v1423_v52 = vld [vmem:[%s2323_s2 + $0x278] sm:$0xff] }
  0x5d   : > { %630 = vmatpush.msra.mxu1 %v543_v25  ;;  %770 = vmatpush.msra.mxu3 %v1397_v50  ;;  %v1437_v25 = vld [vmem:[%s2323_s2 + $0x2e8] sm:$0xff] }
  0x5e   : > { %589 = vmatpush.msrb.mxu0 %v1365_v24  ;;  %983 = vmatpush.msra.mxu2 %v1455_v16  ;;  %v1433_v50 = vld [vmem:[%s2323_s2 + $0x2c8] sm:$0xff] }
  0x5f   : > { %631 = vmatpush.msra.mxu1 %v542_v32  ;;  %771 = vmatpush.msra.mxu3 %v1396_v51  ;;  %v1465_v16 = vld [vmem:[%s2323_s2 + $0x3c8] sm:$0xff] }
  0x60   : > { %590 = vmatpush.msrb.mxu0 %v1364_v31  ;;  %984 = vmatpush.msra.mxu2 %v1454_v19  ;;  %v1464_v19 = vld [vmem:[%s2323_s2 + $0x3c0] sm:$0xff] }
  0x61   : > { %632 = vmatpush.msra.mxu1 %v541_v35  ;;  %772 = vmatpush.msra.mxu3 %v1395_v53 }
  0x62   : > { %591 = vmatpush.msrb.mxu0 %v1363_v34  ;;  %985 = vmatpush.msra.mxu2 %v1453_v27  ;;  %v1452_v34 = vld [vmem:[%s2323_s2 + $0x360] sm:$0xff] }
  0x63   : > { %633 = vmatpush.msra.mxu1 %v540_v38  ;;  %773 = vmatpush.msra.mxu3 %v1394_v54  ;;  %v1451_v38 = vld [vmem:[%s2323_s2 + $0x358] sm:$0xff]  ;;  %v1449_v54 = vld [vmem:[%s2323_s2 + $0x348] sm:$0xff] }
  0x64   : > { %592 = vmatpush.msrb.mxu0 %v1362_v37  ;;  %v1435_v37 = vld [vmem:[%s2323_s2 + $0x2d8] sm:$0xff]  ;;  %986 = vmatpush.msra.mxu2 %v1452_v34 }
  0x65   : > { %634 = vmatpush.msra.mxu1 %v539_v43  ;;  %774 = vmatpush.msra.mxu3 %v1393_v56  ;;  %v1470_v43 = vld [vmem:[%s2323_s2 + $0x3f0] sm:$0xff]  ;;  %v1432_v56 = vld [vmem:[%s2323_s2 + $0x2c0] sm:$0xff]  ;;  %v1443_v34 = vld [vmem:[%s2323_s2 + $0x318] sm:$0xff] }
  0x66   : > { %593 = vmatpush.msrb.mxu0 %v1361_v41  ;;  %v1434_v41 = vld [vmem:[%s2323_s2 + $0x2d0] sm:$0xff]  ;;  %987 = vmatpush.msra.mxu2 %v1451_v38  ;;  %v1487_v38 = vld [vmem:[%s2323_s2 + $0x478] sm:$0xff] }
  0x67   : > { %635 = vmatpush.msra.mxu1 %v538_v46  ;;  %775 = vmatpush.msra.mxu3 %v1392_v58  ;;  %v1448_v58 = vld [vmem:[%s2323_s2 + $0x340] sm:$0xff] }
  0x68   : > { %594 = vmatpush.msrb.mxu0 %v1360_v45  ;;  %636 = vmatmul.f32.vlgmr.msra.gmra.mxu1 %v1529_v26 }
  0x69   : > { %595 = vmatmul.f32.vlgmr.msrb.gmra.mxu0 %v554_v47  ;;  %908 = vmatpush.msrb.mxu1 %v1439_v18  ;;  %v1469_v47 = vld [vmem:[%s2323_s2 + $0x3e8] sm:$0xff] }
  0x6a   : > { %834 = vmatpush.msra.mxu0 %v1423_v52  ;;  %1057 = vmatpush.msrb.mxu3 %v1471_v40  ;;  %v1445_v18 = vld [vmem:[%s2323_s2 + $0x328] sm:$0xff]  ;;  %v1486_v40 = vld [vmem:[%s2323_s2 + $0x470] sm:$0xff] }
  0x6b   : > { %909 = vmatpush.msrb.mxu1 %v1438_v22  ;;  %988 = vmatpush.msra.mxu2 %v1450_v42  ;;  %v1441_v42 = vld [vmem:[%s2323_s2 + $0x308] sm:$0xff] }
  0x6c   : > { %835 = vmatpush.msra.mxu0 %v1422_v55  ;;  %1058 = vmatpush.msrb.mxu3 %v1470_v43  ;;  %v1468_v55 = vld [vmem:[%s2323_s2 + $0x3e0] sm:$0xff] }
  0x6d   : > { %910 = vmatpush.msrb.mxu1 %v1437_v25  ;;  %989 = vmatpush.msra.mxu2 %v1449_v54 }
  0x6e   : > { %836 = vmatpush.msra.mxu0 %v1421_v59  ;;  %1059 = vmatpush.msrb.mxu3 %v1469_v47  ;;  %v1411_v59 = vld [vmem:[%s2323_s2 + $0x218] sm:$0xff] }
  0x6f   : > { %911 = vmatpush.msrb.mxu1 %v1436_v33  ;;  %990 = vmatpush.msra.mxu2 %v1448_v58  ;;  %v1459_v58 = vld [vmem:[%s2323_s2 + $0x398] sm:$0xff] }
  0x70   : > { %837 = vmatpush.msra.mxu0 %v1420_v60  ;;  %1060 = vmatpush.msrb.mxu3 %v1468_v55  ;;  %v1440_v55 = vld [vmem:[%s2323_s2 + $0x300] sm:$0xff] }
  0x71   : > { %912 = vmatpush.msrb.mxu1 %v1435_v37  ;;  %v1426_v37 = vld [vmem:[%s2323_s2 + $0x290] sm:$0xff] }
  0x72   : > { %838 = vmatpush.msra.mxu0 %v1419_v1  ;;  %v1431_v1 = vld [vmem:[%s2323_s2 + $0x2b8] sm:$0xff] }
  0x73   : > { %913 = vmatpush.msrb.mxu1 %v1434_v41  ;;  %v1425_v41 = vld [vmem:[%s2323_s2 + $0x288] sm:$0xff] }
  0x74   : > { %839 = vmatpush.msra.mxu0 %v1418_v2  ;;  %v1447_v2 = vld [vmem:[%s2323_s2 + $0x338] sm:$0xff] }
  0x75   : > { %914 = vmatpush.msrb.mxu1 %v1433_v50  ;;  %991 = vmatpush.msra.mxu2 %v1447_v2 }
  0x76   : > { %840 = vmatpush.msra.mxu0 %v1417_v8 }
  0x77   : > { %915 = vmatpush.msrb.mxu1 %v1432_v56 }
  0x78   : > { %841 = vmatpush.msra.mxu0 %v1416_v9  ;;  %v1430_v9 = vld [vmem:[%s2323_s2 + $0x2b0] sm:$0xff] }
  0x79   : > { %916 = vmatpush.msrb.mxu1 %v1431_v1 }
  0x7a   : > { %842 = vmatpush.msra.mxu0 %v1415_v17  ;;  %v1408_v17 = vld [vmem:[%s2323_s2 + $0x200] sm:$0xff] }
  0x7b   : > { %917 = vmatpush.msrb.mxu1 %v1430_v9 }
  0x7c   : > { %843 = vmatpush.msra.mxu0 %v1414_v23  ;;  %v1463_v23 = vld [vmem:[%s2323_s2 + $0x3b8] sm:$0xff] }
  0x7e   : > { %844 = vmatpush.msra.mxu0 %v1413_v36  ;;  %v1462_v36 = vld [vmem:[%s2323_s2 + $0x3b0] sm:$0xff] }
  0x80   : > { %845 = vmatpush.msra.mxu0 %v1412_v44  ;;  %v1460_v44 = vld [vmem:[%s2323_s2 + $0x3a0] sm:$0xff] }
  0x82   : > { %846 = vmatpush.msra.mxu0 %v1411_v59  ;;  %v1485_v59 = vld [vmem:[%s2323_s2 + $0x468] sm:$0xff] }
  0x90   : > { %v1898_v57 = vpop.f32.mrf.mxu1 }
  0x93   : > { %v307_v0 = vpop.f32.mrf.mxu0 }
  0x94   : > { %v411_v61 = vpop.f32.mrf.mxu2 }
  0x97   : > { %v1909_v62 = vpop.f32.mrf.mxu3 }
  0x98   : > { %v1911_v63 = vpop.f32.mrf.mxu1 }
  0x9b   : > { %v310_v7 = vpop.f32.mrf.mxu0 }
  0x9c   : > { %v414_v4 = vpop.f32.mrf.mxu2 }
  0x9f   : > { %v1919_v3 = vpop.f32.mrf.mxu3 }
  0xa0   : > { %v364_v5 = vpop.f32.mrf.mxu1 }
  0xa1   : > { %v365_v6 = vadd.f32 %v364_v5, %v307_v0  ;;  %v1466_v5 = vld [vmem:[%s2323_s2 + $0x3d0] sm:$0xff] }
  0xa3   : > { %v435_v10 = vadd.f32 %v411_v61, %v365_v6  ;;  %v313_v21 = vpop.f32.mrf.mxu0  ;;  %v1467_v61 = vld [vmem:[%s2323_s2 + $0x3d8] sm:$0xff] }
  0xa4   : > { %v417_v15 = vpop.f32.mrf.mxu2  ;;  %1061 = vmatpush.msrb.mxu3 %v1467_v61 }
  0xa6   : > { %1062 = vmatpush.msrb.mxu3 %v1466_v5 }
  0xa7   : > { %v469_v11 = vpop.f32.mrf.mxu3 }
  0xa8   : > { %v1927_v12 = vadd.f32 %v469_v11, %v435_v10  ;;  %v367_v13 = vpop.f32.mrf.mxu1  ;;  %v1409_v10 = vld [vmem:[%s2323_s2 + $0x208] sm:$0xff]  ;;  %1063 = vmatpush.msrb.mxu3 %v1465_v16 }
  0xa9   : > { %v368_v14 = vadd.f32 %v367_v13, %v310_v7 }
  0xaa   : > { %522 = vst [vmem:[#allocation2 + $0x11] sm:$0xff] %v1927_v12  ;;  %598 = vmatmul.f32.gmra.mxu0 %v1927_v12  ;;  %1064 = vmatpush.msrb.mxu3 %v1464_v19  ;;  %v1481_v19 = vld [vmem:[%s2323_s2 + $0x448] sm:$0xff] }
  0xab   : > { %v436_v20 = vadd.f32 %v414_v4, %v368_v14  ;;  %v316_v45 = vpop.f32.mrf.mxu0  ;;  %v1410_v4 = vld [vmem:[%s2323_s2 + $0x210] sm:$0xff] }
  0xac   : > { %v420_v35 = vpop.f32.mrf.mxu2  ;;  %847 = vmatpush.msra.mxu0 %v1410_v4  ;;  %v1446_v14 = vld [vmem:[%s2323_s2 + $0x330] sm:$0xff]  ;;  %1065 = vmatpush.msrb.mxu3 %v1463_v23  ;;  %v1473_v23 = vld [vmem:[%s2323_s2 + $0x408] sm:$0xff] }
  0xad   : > { %992 = vmatpush.msra.mxu2 %v1446_v14  ;;  %v1483_v14 = vld [vmem:[%s2323_s2 + $0x458] sm:$0xff] }
  0xae   : > { %848 = vmatpush.msra.mxu0 %v1409_v10  ;;  %1066 = vmatpush.msrb.mxu3 %v1462_v36  ;;  %v1113_v36 = vld [vmem:[#allocation2 + $0x92] sm:$0xff] }
  0xaf   : > { %v472_v24 = vpop.f32.mrf.mxu3  ;;  %993 = vmatpush.msra.mxu2 %v1445_v18 }
  0xb0   : > { %v1955_v28 = vadd.f32 %v472_v24, %v436_v20  ;;  %v370_v29 = vpop.f32.mrf.mxu1  ;;  %v1428_v20 = vld [vmem:[%s2323_s2 + $0x2a0] sm:$0xff]  ;;  %849 = vmatpush.msra.mxu0 %v1408_v17 }
  0xb1   : > { %v531_v30 = vld [vmem:[#allocation2 + $0x10] sm:$0xff]  ;;  %v371_v32 = vadd.f32 %v370_v29, %v313_v21  ;;  %v1444_v21 = vld [vmem:[%s2323_s2 + $0x320] sm:$0xff] }
  0xb2   : > { %v1957_v31 = vld [vmem:[#allocation2 + $0x12] sm:$0xff]  ;;  %523 = vst [vmem:[#allocation2 + $0x21] sm:$0xff] %v1955_v28  ;;  %639 = vmatmul.f32.gmra.mxu1 %v531_v30  ;;  %776 = vmatmul.f32.vlgmr.msra.gmra.mxu3 %v531_v30 }
  0xb3   : > { %705 = vmatmul.f32.gmra.mxu2 %v1957_v31  ;;  %601 = vmatmul.f32.gmra.mxu0 %v1955_v28  ;;  %v437_v39 = vadd.f32 %v417_v15, %v371_v32  ;;  %v1427_v30 = vld [vmem:[%s2323_s2 + $0x298] sm:$0xff] }
  0xb4   : > { %v423_v0 = vpop.f32.mrf.mxu2  ;;  %994 = vmatpush.msra.mxu2 %v1444_v21  ;;  %1131 = vmatpush.msrb.mxu0 %v1487_v38 }
  0xb6   : > { %995 = vmatpush.msra.mxu2 %v1443_v34  ;;  %1132 = vmatpush.msrb.mxu0 %v1486_v40  ;;  %v1039_v34 = vld [vmem:[#allocation2 + $0x91] sm:$0xff] }
  0xb7   : > { %v475_v46 = vpop.f32.mrf.mxu3 }
  0xb8   : > { %v1995_v48 = vadd.f32 %v475_v46, %v437_v39  ;;  %v373_v49 = vpop.f32.mrf.mxu1  ;;  %v1461_v39 = vld [vmem:[%s2323_s2 + $0x3a8] sm:$0xff]  ;;  %1133 = vmatpush.msrb.mxu0 %v1485_v59 }
  0xb9   : > { %v2000_v51 = vld [vmem:[#allocation2 + $0x20] sm:$0xff]  ;;  %v374_v53 = vadd.f32 %v373_v49, %v316_v45  ;;  %1067 = vmatpush.msrb.mxu3 %v1461_v39 }
  0xba   : > { %v2002_v52 = vld [vmem:[#allocation2 + $0x22] sm:$0xff]  ;;  %524 = vst [vmem:[#allocation2 + $0x31] sm:$0xff] %v1995_v48  ;;  %642 = vmatmul.f32.gmra.mxu1 %v2000_v51  ;;  %779 = vmatmul.f32.gmra.mxu3 %v2000_v51 }
  0xbb   : > { %708 = vmatmul.f32.gmra.mxu2 %v2002_v52  ;;  %604 = vmatmul.f32.gmra.mxu0 %v1995_v48  ;;  %v438_v60 = vadd.f32 %v420_v35, %v374_v53  ;;  %v1424_v49 = vld [vmem:[%s2323_s2 + $0x280] sm:$0xff] }
  0xbc   : > { %v426_v25 = vpop.f32.mrf.mxu2  ;;  %1068 = vmatpush.msrb.mxu3 %v1460_v44 }
  0xbe   : > { %1069 = vmatpush.msrb.mxu3 %v1459_v58 }
  0xbf   : > { %v478_v6 = vpop.f32.mrf.mxu3 }
  0xc0   : > { %v2039_v7 = vadd.f32 %v478_v6, %v438_v60  ;;  %v376_v8 = vpop.f32.mrf.mxu1  ;;  %v1484_v60 = vld [vmem:[%s2323_s2 + $0x460] sm:$0xff] }
  0xc1   : > { %v2047_v11 = vld [vmem:[#allocation2 + $0x30] sm:$0xff]  ;;  %v377_v15 = vadd.f32 %v376_v8, %v1898_v57  ;;  %v1429_v57 = vld [vmem:[%s2323_s2 + $0x2a8] sm:$0xff]  ;;  %1134 = vmatpush.msrb.mxu0 %v1484_v60  ;;  %v1456_v8 = vld [vmem:[%s2323_s2 + $0x380] sm:$0xff] }
  0xc2   : > { %v2049_v13 = vld [vmem:[#allocation2 + $0x32] sm:$0xff]  ;;  %525 = vst [vmem:[#allocation2 + $0x41] sm:$0xff] %v2039_v7  ;;  %645 = vmatmul.f32.gmra.mxu1 %v2047_v11  ;;  %782 = vmatmul.f32.gmra.mxu3 %v2047_v11 }
  0xc3   : > { %711 = vmatmul.f32.gmra.mxu2 %v2049_v13  ;;  %607 = vmatmul.f32.gmra.mxu0 %v2039_v7  ;;  %v439_v22 = vadd.f32 %v423_v0, %v377_v15  ;;  %v1457_v0 = vld [vmem:[%s2323_s2 + $0x388] sm:$0xff]  ;;  %v1482_v15 = vld [vmem:[%s2323_s2 + $0x450] sm:$0xff] }
  0xc4   : > { %918 = vmatpush.msrb.mxu1 %v1429_v57  ;;  %v429_v54 = vpop.f32.mrf.mxu2  ;;  %1135 = vmatpush.msrb.mxu0 %v1483_v14 }
  0xc6   : > { %919 = vmatpush.msrb.mxu1 %v1428_v20  ;;  %1136 = vmatpush.msrb.mxu0 %v1482_v15  ;;  %v1480_v20 = vld [vmem:[%s2323_s2 + $0x440] sm:$0xff] }
  0xc7   : > { %v481_v24 = vpop.f32.mrf.mxu3 }
  0xc8   : > { %v2084_v27 = vadd.f32 %v481_v24, %v439_v22  ;;  %v379_v29 = vpop.f32.mrf.mxu1  ;;  %920 = vmatpush.msrb.mxu1 %v1427_v30  ;;  %1137 = vmatpush.msrb.mxu0 %v1481_v19  ;;  %v1478_v22 = vld [vmem:[%s2323_s2 + $0x430] sm:$0xff] }
  0xc9   : > { %v2089_v32 = vld [vmem:[#allocation2 + $0x40] sm:$0xff]  ;;  %v380_v35 = vadd.f32 %v379_v29, %v1911_v63  ;;  %v1442_v63 = vld [vmem:[%s2323_s2 + $0x310] sm:$0xff] }
  0xca   : > { %v2091_v33 = vld [vmem:[#allocation2 + $0x42] sm:$0xff]  ;;  %526 = vst [vmem:[#allocation2 + $0x51] sm:$0xff] %v2084_v27  ;;  %648 = vmatmul.f32.gmra.mxu1 %v2089_v32  ;;  %785 = vmatmul.f32.gmra.mxu3 %v2089_v32 }
  0xcb   : > { %714 = vmatmul.f32.gmra.mxu2 %v2091_v33  ;;  %610 = vmatmul.f32.gmra.mxu0 %v2084_v27  ;;  %v440_v43 = vadd.f32 %v426_v25, %v380_v35 }
  0xcc   : > { %921 = vmatpush.msrb.mxu1 %v1426_v37  ;;  %996 = vmatpush.msra.mxu2 %v1442_v63  ;;  %v432_v10 = vpop.f32.mrf.mxu2 }
  0xcd   : > { %1138 = vmatpush.msrb.mxu0 %v1480_v20 }
  0xce   : > { %922 = vmatpush.msrb.mxu1 %v1425_v41  ;;  %997 = vmatpush.msra.mxu2 %v1441_v42 }
  0xcf   : > { %v484_v45 = vpop.f32.mrf.mxu3 }
  0xd0   : > { %v2129_v46 = vadd.f32 %v484_v45, %v440_v43  ;;  %v382_v47 = vpop.f32.mrf.mxu1  ;;  %923 = vmatpush.msrb.mxu1 %v1424_v49  ;;  %998 = vmatpush.msra.mxu2 %v1440_v55 }
  0xd1   : > { %v2134_v50 = vld [vmem:[#allocation2 + $0x50] sm:$0xff]  ;;  %v383_v56 = vadd.f32 %v382_v47, %v1909_v62 }
  0xd2   : > { %v2136_v53 = vld [vmem:[#allocation2 + $0x52] sm:$0xff]  ;;  %527 = vst [vmem:[#allocation2 + $0x61] sm:$0xff] %v2129_v46  ;;  %651 = vmatmul.f32.gmra.mxu1 %v2134_v50  ;;  %788 = vmatmul.f32.gmra.mxu3 %v2134_v50 }
  0xd3   : > { %717 = vmatmul.f32.gmra.mxu2 %v2136_v53  ;;  %613 = vmatmul.f32.gmra.mxu0 %v2129_v46  ;;  %v1458_v62 = vld [vmem:[%s2323_s2 + $0x390] sm:$0xff]  ;;  %v441_v61 = vadd.f32 %v429_v54, %v383_v56 }
  0xd4   : > { %1495 = vmatpush.msrb.mxu2 %v1487_v38  ;;  %1070 = vmatpush.msrb.mxu3 %v1458_v62 }
  0xd6   : > { %1496 = vmatpush.msrb.mxu2 %v1486_v40  ;;  %1071 = vmatpush.msrb.mxu3 %v1457_v0 }
  0xd7   : > { %v487_v1 = vpop.f32.mrf.mxu3 }
  0xd8   : > { %v2162_v2 = vadd.f32 %v487_v1, %v441_v61  ;;  %v385_v4 = vpop.f32.mrf.mxu1  ;;  %1072 = vmatpush.msrb.mxu3 %v1456_v8  ;;  %1497 = vmatpush.msrb.mxu2 %v1485_v59 }
  0xd9   : > { %v2164_v5 = vld [vmem:[#allocation2 + $0x60] sm:$0xff]  ;;  %v386_v9 = vadd.f32 %v385_v4, %v1919_v3 }
  0xda   : > { %v2166_v6 = vld [vmem:[#allocation2 + $0x62] sm:$0xff]  ;;  %528 = vst [vmem:[#allocation2 + $0x71] sm:$0xff] %v2162_v2  ;;  %654 = vmatmul.f32.gmra.mxu1 %v2164_v5  ;;  %791 = vmatmul.f32.gmra.mxu3 %v2164_v5 }
  0xdb   : > { %720 = vmatmul.f32.gmra.mxu2 %v2166_v6  ;;  %616 = vmatmul.f32.gmra.mxu0 %v2162_v2  ;;  %v442_v3 = vadd.f32 %v432_v10, %v386_v9 }
  0xdc   : > { %1498 = vmatpush.msrb.mxu2 %v1484_v60 }
  0xdd   : > { %v703_v30 = vpop.f32.mrf.mxu2 }
  0xde   : > { %1499 = vmatpush.msrb.mxu2 %v1483_v14 }
  0xdf   : > { %v490_v16 = vpop.f32.mrf.mxu3 }
  0xe0   : > { %v2183_v17 = vadd.f32 %v490_v16, %v442_v3  ;;  %1500 = vmatpush.msrb.mxu2 %v1482_v15 }
  0xe1   : > { %v2185_v57 = vld [vmem:[#allocation2 + $0x70] sm:$0xff] }
  0xe2   : > { %v2187_v18 = vld [vmem:[#allocation2 + $0x72] sm:$0xff]  ;;  %529 = vst [vmem:[#allocation2 + $0x81] sm:$0xff] %v2183_v17  ;;  %657 = vmatmul.f32.gmra.mxu1 %v2185_v57  ;;  %794 = vmatmul.f32.gmra.mxu3 %v2185_v57 }
  0xe3   : > { %723 = vmatmul.f32.gmra.mxu2 %v2187_v18  ;;  %850 = vmatmul.f32.vlgmr.msra.gmra.mxu0 %v1927_v12  ;;  %v1479_v12 = vld [vmem:[%s2323_s2 + $0x438] sm:$0xff] }
  0xe4   : > { %1501 = vmatpush.msrb.mxu2 %v1481_v19  ;;  %1139 = vmatpush.msrb.mxu0 %v1479_v12 }
  0xe5   : > { %v637_v25 = vpop.f32.mrf.mxu1 }
  0xe6   : > { %1502 = vmatpush.msrb.mxu2 %v1480_v20  ;;  %1140 = vmatpush.msrb.mxu0 %v1478_v22  ;;  %v596_v24 = vpop.f32.mrf.mxu0 }
  0xe7   : > { %v638_v29 = vadd.f32 %v637_v25, %v596_v24 }
  0xe8   : > { %1503 = vmatpush.msrb.mxu2 %v1479_v12 }
  0xe9   : > { %v742_v21 = vld [vmem:[#allocation2 + $0x80] sm:$0xff] }
  0xea   : > { %924 = vmatmul.f32.vlgmr.msrb.gmra.mxu1 %v1957_v31  ;;  %797 = vmatmul.f32.gmra.mxu3 %v742_v21  ;;  %v1477_v31 = vld [vmem:[%s2323_s2 + $0x428] sm:$0xff] }
  0xeb   : > { %999 = vmatmul.f32.vlgmr.msra.gmra.mxu2 %v2000_v51  ;;  %853 = vmatmul.f32.gmra.mxu0 %v1955_v28  ;;  %v1476_v51 = vld [vmem:[%s2323_s2 + $0x420] sm:$0xff] }
  0xec   : > { %1504 = vmatpush.msrb.mxu2 %v1478_v22  ;;  %1141 = vmatpush.msrb.mxu0 %v1477_v31 }
  0xee   : > { %1505 = vmatpush.msrb.mxu2 %v1477_v31  ;;  %1142 = vmatpush.msrb.mxu0 %v1476_v51 }
  0xf0   : > { %1506 = vmatpush.msrb.mxu2 %v1476_v51 }
  0xf2   : > { %927 = vmatmul.f32.gmra.mxu1 %v2002_v52  ;;  %1073 = vmatmul.f32.vlgmr.msrb.gmra.mxu3 %v1955_v28  ;;  %v1475_v28 = vld [vmem:[%s2323_s2 + $0x418] sm:$0xff] }
  0xf3   : > { %1002 = vmatmul.f32.gmra.mxu2 %v2047_v11  ;;  %856 = vmatmul.f32.gmra.mxu0 %v1995_v48  ;;  %v1474_v11 = vld [vmem:[%s2323_s2 + $0x410] sm:$0xff] }
  0xf4   : > { %1143 = vmatpush.msrb.mxu0 %v1475_v28  ;;  %1507 = vmatpush.msrb.mxu2 %v1475_v28 }
  0xf6   : > { %1144 = vmatpush.msrb.mxu0 %v1474_v11  ;;  %1508 = vmatpush.msrb.mxu2 %v1474_v11 }
  0xf8   : > { %1145 = vmatpush.msrb.mxu0 %v1473_v23  ;;  %1509 = vmatpush.msrb.mxu2 %v1473_v23 }
  0xfa   : > { %930 = vmatmul.f32.gmra.mxu1 %v2049_v13  ;;  %1076 = vmatmul.f32.gmra.mxu3 %v1995_v48  ;;  %v1472_v48 = vld [vmem:[%s2323_s2 + $0x400] sm:$0xff] }
  0xfb   : > { %1005 = vmatmul.f32.gmra.mxu2 %v2089_v32  ;;  %859 = vmatmul.f32.gmra.mxu0 %v2039_v7  ;;  %v727_v32 = vadd.f32 %v703_v30, %v638_v29 }
  0xfc   : > { %1146 = vmatpush.msrb.mxu0 %v1472_v48  ;;  %1510 = vmatpush.msrb.mxu2 %v1472_v48 }
 0x102   : > { %933 = vmatmul.f32.gmra.mxu1 %v2091_v33  ;;  %1079 = vmatmul.f32.gmra.mxu3 %v2039_v7  ;;  %v890_v7 = vld [vmem:[#allocation2 + $0x82] sm:$0xff] }
 0x103   : > { %1008 = vmatmul.f32.gmra.mxu2 %v2134_v50  ;;  %862 = vmatmul.f32.gmra.mxu0 %v2084_v27 }
 0x10a   : > { %936 = vmatmul.f32.gmra.mxu1 %v2136_v53  ;;  %1082 = vmatmul.f32.gmra.mxu3 %v2084_v27 }
 0x10b   : > { %1011 = vmatmul.f32.gmra.mxu2 %v2164_v5  ;;  %865 = vmatmul.f32.gmra.mxu0 %v2129_v46 }
 0x112   : > { %939 = vmatmul.f32.gmra.mxu1 %v2166_v6  ;;  %1085 = vmatmul.f32.gmra.mxu3 %v2129_v46 }
 0x113   : > { %1014 = vmatmul.f32.gmra.mxu2 %v2185_v57  ;;  %868 = vmatmul.f32.gmra.mxu0 %v2162_v2 }
 0x11a   : > { %942 = vmatmul.f32.gmra.mxu1 %v2187_v18  ;;  %1088 = vmatmul.f32.gmra.mxu3 %v2162_v2 }
 0x11b   : > { %1017 = vmatmul.f32.gmra.mxu2 %v742_v21  ;;  %871 = vmatmul.f32.gmra.mxu0 %v2183_v17 }
 0x122   : > { %945 = vmatmul.f32.gmra.mxu1 %v890_v7  ;;  %1091 = vmatmul.f32.gmra.mxu3 %v2183_v17 }
 0x123   : > { %1020 = vmatmul.f32.gmra.mxu2 %v1529_v26  ;;  %1147 = vmatmul.f32.vlgmr.msrb.gmra.mxu0 %v2002_v52 }
 0x127   : > { %v599_v27 = vpop.f32.mrf.mxu0 }
 0x12a   : > { %1094 = vmatmul.f32.gmra.mxu3 %v1039_v34 }
 0x12b   : > { %1165 = vmatmul.f32.vlgmr.msrb.gmra.mxu2 %v890_v7  ;;  %1150 = vmatmul.f32.gmra.mxu0 %v2049_v13 }
 0x12f   : > { %v640_v35 = vpop.f32.mrf.mxu1 }
 0x130   : > { %v641_v37 = vadd.f32 %v640_v35, %v599_v27  ;;  %v602_v63 = vpop.f32.mrf.mxu0 }
 0x133   : > { %1168 = vmatmul.f32.gmra.mxu2 %v1113_v36  ;;  %1153 = vmatmul.f32.gmra.mxu0 %v2091_v33 }
 0x135   : > { %v777_v26 = vpop.f32.mrf.mxu3 }
 0x136   : > { %v706_v38 = vpop.f32.mrf.mxu2  ;;  %v2255_v40 = vadd.f32 %v777_v26, %v727_v32 }
 0x137   : > { %v728_v39 = vadd.f32 %v706_v38, %v641_v37  ;;  %v643_v41 = vpop.f32.mrf.mxu1 }
 0x138   : > { %v644_v52 = vadd.f32 %v643_v41, %v602_v63  ;;  %v605_v42 = vpop.f32.mrf.mxu0 }
 0x13b   : > { %1156 = vmatmul.f32.gmra.mxu0 %v2136_v53 }
 0x13d   : > { %v780_v13 = vpop.f32.mrf.mxu3 }
 0x13e   : > { %v709_v43 = vpop.f32.mrf.mxu2  ;;  %v2258_v45 = vadd.f32 %v780_v13, %v728_v39 }
 0x13f   : > { %v729_v44 = vadd.f32 %v709_v43, %v644_v52  ;;  %v646_v46 = vpop.f32.mrf.mxu1 }
 0x140   : > { %v647_v47 = vadd.f32 %v646_v46, %v605_v42  ;;  %v608_v49 = vpop.f32.mrf.mxu0 }
 0x143   : > { %1159 = vmatmul.f32.gmra.mxu0 %v2166_v6 }
 0x145   : > { %v783_v54 = vpop.f32.mrf.mxu3 }
 0x146   : > { %v712_v33 = vpop.f32.mrf.mxu2  ;;  %v2261_v55 = vadd.f32 %v783_v54, %v729_v44 }
 0x147   : > { %v730_v50 = vadd.f32 %v712_v33, %v647_v47  ;;  %v649_v56 = vpop.f32.mrf.mxu1 }
 0x148   : > { %v650_v58 = vadd.f32 %v649_v56, %v608_v49  ;;  %v611_v59 = vpop.f32.mrf.mxu0 }
 0x14b   : > { %1162 = vmatmul.f32.gmra.mxu0 %v2187_v18 }
 0x14d   : > { %v786_v60 = vpop.f32.mrf.mxu3 }
 0x14e   : > { %v715_v53 = vpop.f32.mrf.mxu2  ;;  %v2264_v61 = vadd.f32 %v786_v60, %v730_v50 }
 0x14f   : > { %v731_v62 = vadd.f32 %v715_v53, %v650_v58  ;;  %v652_v0 = vpop.f32.mrf.mxu1 }
 0x150   : > { %v653_v1 = vadd.f32 %v652_v0, %v611_v59  ;;  %v614_v2 = vpop.f32.mrf.mxu0 }
 0x155   : > { %v789_v6 = vpop.f32.mrf.mxu3 }
 0x156   : > { %v718_v4 = vpop.f32.mrf.mxu2  ;;  %v2266_v8 = vadd.f32 %v789_v6, %v731_v62 }
 0x157   : > { %v732_v5 = vadd.f32 %v718_v4, %v653_v1  ;;  %v655_v9 = vpop.f32.mrf.mxu1 }
 0x158   : > { %v617_v10 = vpop.f32.mrf.mxu0  ;;  %v656_v14 = vadd.f32 %v655_v9, %v614_v2 }
 0x15d   : > { %v792_v16 = vpop.f32.mrf.mxu3 }
 0x15e   : > { %v721_v15 = vpop.f32.mrf.mxu2  ;;  %v2268_v17 = vadd.f32 %v792_v16, %v732_v5 }
 0x15f   : > { %v733_v3 = vadd.f32 %v721_v15, %v656_v14  ;;  %v658_v57 = vpop.f32.mrf.mxu1 }
 0x160   : > { %v851_v18 = vpop.f32.mrf.mxu0  ;;  %v659_v19 = vadd.f32 %v658_v57, %v617_v10 }
 0x161   : > { %v875_v42 = vadd.f32 %v851_v18, %v2255_v40 }
 0x165   : > { %v795_v12 = vpop.f32.mrf.mxu3 }
 0x166   : > { %v724_v20 = vpop.f32.mrf.mxu2  ;;  %v807_v58 = vadd.f32 %v795_v12, %v733_v3 }
 0x167   : > { %v734_v21 = vadd.f32 %v724_v20, %v659_v19  ;;  %v925_v22 = vpop.f32.mrf.mxu1 }
 0x168   : > { %v854_v31 = vpop.f32.mrf.mxu0  ;;  %v949_v44 = vadd.f32 %v925_v22, %v875_v42 }
 0x169   : > { %v876_v50 = vadd.f32 %v854_v31, %v2258_v45 }
 0x16d   : > { %v798_v28 = vpop.f32.mrf.mxu3 }
 0x16e   : > { %v1000_v51 = vpop.f32.mrf.mxu2  ;;  %v808_v15 = vadd.f32 %v798_v28, %v734_v21 }
 0x16f   : > { %v928_v23 = vpop.f32.mrf.mxu1  ;;  %v1024_v13 = vadd.f32 %v1000_v51, %v949_v44 }
 0x170   : > { %v857_v11 = vpop.f32.mrf.mxu0  ;;  %v950_v40 = vadd.f32 %v928_v23, %v876_v50 }
 0x171   : > { %v877_v4 = vadd.f32 %v857_v11, %v2261_v55 }
 0x175   : > { %v1074_v24 = vpop.f32.mrf.mxu3 }
 0x176   : > { %v1003_v48 = vpop.f32.mrf.mxu2  ;;  %v1098_v49 = vadd.f32 %v1074_v24, %v1024_v13 }
 0x177   : > { %v931_v29 = vpop.f32.mrf.mxu1  ;;  %v1025_v59 = vadd.f32 %v1003_v48, %v950_v40 }
 0x178   : > { %v860_v25 = vpop.f32.mrf.mxu0  ;;  %v951_v9 = vadd.f32 %v931_v29, %v877_v4 }
 0x179   : > { %v878_v51 = vadd.f32 %v860_v25, %v2264_v61 }
 0x17d   : > { %v1077_v32 = vpop.f32.mrf.mxu3 }
 0x17e   : > { %v1006_v30 = vpop.f32.mrf.mxu2  ;;  %v1099_v60 = vadd.f32 %v1077_v32, %v1025_v59 }
 0x17f   : > { %v934_v27 = vpop.f32.mrf.mxu1  ;;  %v1026_v3 = vadd.f32 %v1006_v30, %v951_v9 }
 0x180   : > { %v2270_v7 = vpop.f32.mrf.mxu0  ;;  %v952_v21 = vadd.f32 %v934_v27, %v878_v51 }
 0x181   : > { %v879_v61 = vadd.f32 %v2270_v7, %v2266_v8 }
 0x185   : > { %v1080_v35 = vpop.f32.mrf.mxu3 }
 0x186   : > { %v1009_v34 = vpop.f32.mrf.mxu2  ;;  %v1100_v22 = vadd.f32 %v1080_v35, %v1026_v3 }
 0x187   : > { %v2276_v38 = vpop.f32.mrf.mxu1  ;;  %v1027_v30 = vadd.f32 %v1009_v34, %v952_v21 }
 0x188   : > { %v2272_v36 = vpop.f32.mrf.mxu0  ;;  %v953_v44 = vadd.f32 %v2276_v38, %v879_v61 }
 0x18d   : > { %v1083_v63 = vpop.f32.mrf.mxu3 }
 0x18e   : > { %v2274_v37 = vpop.f32.mrf.mxu2  ;;  %v1101_v35 = vadd.f32 %v1083_v63, %v1027_v30  ;;  %v880_v63 = vadd.f32 %v2272_v36, %v2268_v17 }
 0x18f   : > { %v2283_v43 = vpop.f32.mrf.mxu1 }
 0x190   : > { %v869_v39 = vpop.f32.mrf.mxu0 }
 0x191   : > { %v881_v62 = vadd.f32 %v869_v39, %v807_v58 }
 0x195   : > { %v2280_v41 = vpop.f32.mrf.mxu3 }
 0x196   : > { %v2278_v26 = vpop.f32.mrf.mxu2 }
 0x197   : > { %v943_v56 = vpop.f32.mrf.mxu1 }
 0x198   : > { %v872_v52 = vpop.f32.mrf.mxu0  ;;  %v955_v1 = vadd.f32 %v943_v56, %v881_v62 }
 0x199   : > { %v882_v20 = vadd.f32 %v872_v52, %v808_v15 }
 0x19d   : > { %v2286_v47 = vpop.f32.mrf.mxu3 }
 0x19e   : > { %v1018_v46 = vpop.f32.mrf.mxu2 }
 0x19f   : > { %v1030_v6 = vadd.f32 %v1018_v46, %v955_v1  ;;  %v946_v57 = vpop.f32.mrf.mxu1  ;;  %v1028_v46 = vadd.f32 %v2274_v37, %v953_v44 }
 0x1a0   : > { %v1148_v33 = vpop.f32.mrf.mxu0  ;;  %v956_v31 = vadd.f32 %v946_v57, %v882_v20 }
 0x1a1   : > { %v1172_v54 = vadd.f32 %v1148_v33, %v1098_v49  ;;  %v1102_v49 = vadd.f32 %v2280_v41, %v1028_v46 }
 0x1a3   : > { %1180 = vst [vmem:[%s2291_s14] sm:$0xff] %v1172_v54  ;;  %v1201_v45 = vmul.f32 %v1172_v54, %v1172_v54 }
 0x1a5   : > { %v1092_v0 = vpop.f32.mrf.mxu3 }
 0x1a6   : > { %v1021_v53 = vpop.f32.mrf.mxu2  ;;  %v1104_v16 = vadd.f32 %v1092_v0, %v1030_v6 }
 0x1a7   : > { %v1031_v48 = vadd.f32 %v1021_v53, %v956_v31 }
 0x1a8   : > { %v1151_v2 = vpop.f32.mrf.mxu0 }
 0x1a9   : > { %v1173_v5 = vadd.f32 %v1151_v2, %v1099_v60 }
 0x1ab   : > { %1181 = vst [vmem:[%s2291_s14 + $0x8] sm:$0xff] %v1173_v5  ;;  %v1188_v10 = vadd.f32 %v1173_v5, %v1172_v54  ;;  %v1202_v14 = vmul.f32 %v1173_v5, %v1173_v5  ;;  %v954_v54 = vadd.f32 %v2283_v43, %v880_v63 }
 0x1ad   : > { %v1209_v19 = vadd.f32 %v1202_v14, %v1201_v45  ;;  %v1095_v11 = vpop.f32.mrf.mxu3  ;;  %v1029_v38 = vadd.f32 %v2278_v26, %v954_v54 }
 0x1ae   : > { %v1166_v18 = vpop.f32.mrf.mxu2  ;;  %v1105_v29 = vadd.f32 %v1095_v11, %v1031_v48 }
 0x1af   : > { %v1178_v12 = vadd.f32 %v1166_v18, %v1104_v16  ;;  %v1103_v56 = vadd.f32 %v2286_v47, %v1029_v38 }
 0x1b0   : > { %v1154_v55 = vpop.f32.mrf.mxu0 }
 0x1b1   : > { %1186 = vst [vmem:[%s2291_s14 + $0x30] sm:$0xff] %v1178_v12  ;;  %v1174_v23 = vadd.f32 %v1154_v55, %v1100_v22  ;;  %v1207_v53 = vmul.f32 %v1178_v12, %v1178_v12 }
 0x1b3   : > { %1182 = vst [vmem:[%s2291_s14 + $0x10] sm:$0xff] %v1174_v23  ;;  %v1189_v28 = vadd.f32 %v1188_v10, %v1174_v23  ;;  %v1203_v24 = vmul.f32 %v1174_v23, %v1174_v23 }
 0x1b5   : > { %v1210_v39 = vadd.f32 %v1209_v19, %v1203_v24 }
 0x1b6   : > { %v1169_v32 = vpop.f32.mrf.mxu2 }
 0x1b7   : > { %v1179_v52 = vadd.f32 %v1169_v32, %v1105_v29 }
 0x1b8   : > { %v1157_v42 = vpop.f32.mrf.mxu0 }
 0x1b9   : > { %1187 = vst [vmem:[%s2291_s14 + $0x38] sm:$0xff] %v1179_v52  ;;  %v1175_v25 = vadd.f32 %v1157_v42, %v1101_v35  ;;  %v1208_v36 = vmul.f32 %v1179_v52, %v1179_v52 }
 0x1bb   : > { %1183 = vst [vmem:[%s2291_s14 + $0x18] sm:$0xff] %v1175_v25  ;;  %v1190_v27 = vadd.f32 %v1189_v28, %v1175_v25  ;;  %v1204_v13 = vmul.f32 %v1175_v25, %v1175_v25 }
 0x1bd   : > { %v1211_v34 = vadd.f32 %v1210_v39, %v1204_v13 }
 0x1c0   : > { %v1160_v33 = vpop.f32.mrf.mxu0 }
 0x1c1   : > { %v1176_v50 = vadd.f32 %v1160_v33, %v1102_v49 }
 0x1c3   : > { %1184 = vst [vmem:[%s2291_s14 + $0x20] sm:$0xff] %v1176_v50  ;;  %v1191_v8 = vadd.f32 %v1190_v27, %v1176_v50  ;;  %v1205_v7 = vmul.f32 %v1176_v50, %v1176_v50 }
 0x1c5   : > { %v1212_v40 = vadd.f32 %v1211_v34, %v1205_v7 }
 0x1c8   : > { %v1163_v58 = vpop.f32.mrf.mxu0 }
 0x1c9   : > { %v1177_v37 = vadd.f32 %v1163_v58, %v1103_v56 }
 0x1cb   : > { %1185 = vst [vmem:[%s2291_s14 + $0x28] sm:$0xff] %v1177_v37  ;;  %v1192_v59 = vadd.f32 %v1191_v8, %v1177_v37  ;;  %v1206_v41 = vmul.f32 %v1177_v37, %v1177_v37 }
 0x1cd   : > { %v1193_v62 = vadd.f32 %v1192_v59, %v1178_v12  ;;  %v1213_v17 = vadd.f32 %v1212_v40, %v1206_v41 }
 0x1cf   : > { %v1194_v60 = vadd.f32 %v1193_v62, %v1179_v52  ;;  %v1214_v43 = vadd.f32 %v1213_v17, %v1207_v53 }
 0x1d1   : > { %v1195_v0 = vrot.slane %v1194_v60, 4  ;;  %v1215_v1 = vadd.f32 %v1214_v43, %v1208_v36 }
 0x1d3   : > { %v1196_v2 = vadd.f32 %v1195_v0, %v1194_v60  ;;  %v1216_v4 = vrot.slane %v1215_v1, 4 }
 0x1d5   : > { %v1197_v26 = vrot.slane %v1196_v2, 2  ;;  %v1217_v5 = vadd.f32 %v1216_v4, %v1215_v1 }
 0x1d7   : > { %v1198_v6 = vadd.f32 %v1197_v26, %v1196_v2  ;;  %v1218_v47 = vrot.slane %v1217_v5, 2 }
 0x1d9   : > { %v1199_v9 = vrot.slane %v1198_v6, 1  ;;  %v1219_v45 = vadd.f32 %v1218_v47, %v1217_v5 }
 0x1db   : > { %v1220_v10 = vrot.slane %v1219_v45, 1  ;;  %v1200_v14 = vadd.f32 %v1199_v9, %v1198_v6 }
 0x1dd   : > { %v1221_v15 = vadd.f32 %v1220_v10, %v1219_v45 }
 0x1df   : > { %v1223_v16 = vsel %vm1222_vm2, %v1200_v14, %v1221_v15 }
 0x1e0   : > { %v1225_v3 = vsel %vm1224_vm3, %v1223_v16, 0.0 }
 0x1e1   : > { %1226 = vst [vmem:[%s208_s20] sm:$0xff] %v1225_v3 }
 0x1e2 PF: > { %s15_s15 = sadd.s32 1, %s1527_s15  }
 0x1e3   : > { %p12_p4 = scmp.ge.s32.totalorder %s15_s15, 4  }
 0x1e5   :  { %14 = sbr.rel (!%p12_p4) target bundleno = 1 (0x1), region = 87 }

</bundles_post_ra>
